<compile_context>
chip_gen: v5e
topology: v5e:2x2
jax: 0.10.0
libtpu: 0.0.40
codegen_flags: <defaults>
</compile_context>

<pallas_src>
import functools

import jax
import jax.numpy as jnp
from jax.experimental import pallas as pl
from jax.experimental.pallas import tpu as pltpu


def _round_up(a, m):
    return ((a + m - 1) // m) * m


def _weight_norm(v, g):
    """torch.nn.utils.weight_norm (default dim=0) applied to a Conv1d weight."""
    norm = jnp.sqrt(jnp.sum(v * v, axis=(1, 2), keepdims=True))
    return g * v / norm


def _pad_axis(a, axis, new_size):
    pad = [(0, 0)] * a.ndim
    pad[axis] = (0, new_size - a.shape[axis])
    return jnp.pad(a, pad)


def _causal_conv_block_kernel(xp_ref, w1_ref, b1_ref, w2_ref, b2_ref, *rest,
                              Bt, L_p, Ppad, P, K, dilation, Cin_k, Co_p,
                              has_res_conv, use_im2col, final_relu,
                              neg_slope, mxu_dtype):
    # xp_ref : (Bt, Ppad+L_p, Cin_k)  time-major, causally left-padded input
    # w1_ref : (K*Cin_k, Co_p) if use_im2col else (K, Cin_k, Co_p)
    # b1_ref : (1, Co_p)
    # w2_ref : (K, Co_p, Co_p)     b2_ref : (1, Co_p)
    # [wr_ref: (Cin_k, Co_p), br_ref: (1, Co_p)]  only when has_res_conv
    # o_ref  : (Bt, L_p, Co_p)
    # h_scr  : (Bt, Ppad+L_p, Co_p) VMEM scratch holding the causal pad of h1
    if has_res_conv:
        wr_ref, br_ref, o_ref, h_scr = rest
    else:
        o_ref, h_scr = rest

    s0 = Ppad - P                           # static offset of the first tap

    # ---- conv1 (causal, dilated): out1[l] = b1 + sum_k x[l-(K-1-k)*d] @ W1[k]
    if use_im2col:
        # Small contraction dim: fold the K taps into one (Bt*L, K*Cin) dot.
        cols = [xp_ref[:, s0 + k * dilation:s0 + k * dilation + L_p, :]
                for k in range(K)]
        x_col = jnp.concatenate(cols, axis=-1).astype(mxu_dtype)
        acc1 = jnp.dot(x_col.reshape(Bt * L_p, K * Cin_k), w1_ref[...],
                       preferred_element_type=jnp.float32)
    else:
        x_mm = xp_ref[...].astype(mxu_dtype)
        acc1 = jnp.zeros((Bt * L_p, Co_p), jnp.float32)
        for k in range(K):
            s = s0 + k * dilation
            acc1 = acc1 + jnp.dot(
                x_mm[:, s:s + L_p, :].reshape(Bt * L_p, Cin_k), w1_ref[k],
                preferred_element_type=jnp.float32)
    h1 = jax.nn.leaky_relu(acc1 + b1_ref[...], negative_slope=neg_slope)

    # ---- conv2: causal pad of h1 via a zero-initialised scratch ref
    # (no jnp.pad copy: zero the first Ppad rows, store h1 at an aligned
    #  offset, read each tap window directly out of the scratch ref).
    if Ppad > 0:
        h_scr[:, :Ppad, :] = jnp.zeros((Bt, Ppad, Co_p), h_scr.dtype)
    h_scr[:, Ppad:, :] = h1.reshape(Bt, L_p, Co_p).astype(h_scr.dtype)
    acc2 = jnp.zeros((Bt * L_p, Co_p), jnp.float32)
    for k in range(K):
        s = s0 + k * dilation
        acc2 = acc2 + jnp.dot(
            h_scr[:, s:s + L_p, :].reshape(Bt * L_p, Co_p), w2_ref[k],
            preferred_element_type=jnp.float32)
    out_causal = jax.nn.leaky_relu(acc2 + b2_ref[...], negative_slope=neg_slope)

    # ---- residual branch: identity (kept in f32) or 1x1 conv (one matmul)
    x_res = xp_ref[:, Ppad:, :].reshape(Bt * L_p, Cin_k)
    if has_res_conv:
        res = jnp.dot(x_res.astype(mxu_dtype), wr_ref[...],
                      preferred_element_type=jnp.float32) + br_ref[...]
    else:
        res = x_res.astype(jnp.float32)     # no bf16 rounding of the skip path

    out = out_causal + res
    if final_relu:
        out = jax.nn.leaky_relu(out, negative_slope=neg_slope)
    o_ref[...] = out.reshape(Bt, L_p, Co_p).astype(o_ref.dtype)


def causal_convolution_block(x, params, *, kernel_size, dilation, final=False,
                             batch_tile=None, negative_slope=0.01,
                             mxu_dtype=jnp.bfloat16,
                             vmem_budget_bytes=40 * 1024 * 1024):
    """x: (B, in_channels, L) float32 (NCL, like the PyTorch module).

    Returns (B, out_channels, L) float32.
    """
    # TODO(synk): when stacking blocks (TCN), keep the (B, L, C) time-major
    # layout between consecutive blocks (transpose only at stack boundaries)
    # to avoid the per-block transpose round trip through HBM.
    B, Cin, L = x.shape
    K = int(kernel_size)
    P = (K - 1) * dilation

    w1 = _weight_norm(params["conv1_v"], params["conv1_g"])       # (Cout, Cin, K)
    w2 = _weight_norm(params["conv2_v"], params["conv2_g"])       # (Cout, Cout, K)
    Cout = w1.shape[0]
    has_res_conv = "res_w" in params                              # upordownsample
    if not has_res_conv:
        assert Cin == Cout, "identity residual needs in_channels == out_channels"

    mxu_itemsize = jnp.dtype(mxu_dtype).itemsize
    align = 8 * max(1, 4 // mxu_itemsize)     # sublane tile: 8 (f32) / 16 (bf16)
    L_p = _round_up(L, align)
    Ppad = _round_up(P, align) if P > 0 else 0

    # Lane-dense channels: pad Cout (and, for the identity residual, Cin) to a
    # multiple of 128.  Padded channels are exactly zero and sliced off after.
    Co_p = _round_up(Cout, 128)
    Cin_k = Cin if has_res_conv else Co_p
    use_im2col = Cin_k < 128          # fold the K taps into the contraction dim

    # Identity residual must stay f32, so only cast the input to the MXU dtype
    # when it is exclusively a matmul operand (res-conv case: halves input DMA).
    x_in_dtype = mxu_dtype if has_res_conv else jnp.float32

    # ---- per-step VMEM footprint model + batch-tile selection -------------
    w_bytes = ((K * Cin_k * Co_p + K * Co_p * Co_p
                + (Cin_k * Co_p if has_res_conv else 0)) * mxu_itemsize
               + 3 * Co_p * 4)

    def _per_step_bytes(bt):
        n = 2 * bt * (Ppad + L_p) * Cin_k * jnp.dtype(x_in_dtype).itemsize
        n += 2 * bt * L_p * Co_p * 4                      # double-buffered output
        n += bt * (Ppad + L_p) * Co_p * mxu_itemsize      # conv2 scratch
        n += 5 * bt * L_p * Co_p * 4                      # live f32 intermediates
        if use_im2col:
            n += bt * L_p * K * Cin_k * (4 + mxu_itemsize)
        return n

    if batch_tile is None:
        tile_budget = vmem_budget_bytes - 2 * w_bytes
        divisors = [d for d in range(1, B + 1) if B % d == 0]
        fitting = [d for d in divisors if _per_step_bytes(d) <= tile_budget] or [1]
        pipelined = [d for d in fitting if B // d >= 2] or fitting
        batch_tile = None
        for rows in (512, 256, 128):                  # smallest tile with enough
            cands = [d for d in pipelined if d * L_p >= rows]   # MXU rows -> most
            if cands:                                           # grid steps
                batch_tile = min(cands)
                break
        if batch_tile is None:
            batch_tile = max(pipelined)
    Bt = int(batch_tile)
    assert B % Bt == 0, "batch_tile must divide the batch size"
    grid = (B // Bt,)

    # ---- host-side input/weight prep (weight_norm folded; single HBM pad) --
    x_tm = jnp.transpose(x, (0, 2, 1)).astype(jnp.float32)        # (B, L, Cin)
    if Cin_k > Cin:
        x_tm = _pad_axis(x_tm, 2, Cin_k)
    xp = jnp.pad(x_tm, ((0, 0), (Ppad, L_p - L), (0, 0))).astype(x_in_dtype)

    w1_c = _pad_axis(_pad_axis(jnp.transpose(w1, (2, 1, 0)), 1, Cin_k), 2, Co_p)
    w1_c = w1_c.astype(mxu_dtype)                                 # (K, Cin_k, Co_p)
    if use_im2col:
        w1_c = w1_c.reshape(K * Cin_k, Co_p)
    w2_c = _pad_axis(_pad_axis(jnp.transpose(w2, (2, 1, 0)), 1, Co_p), 2, Co_p)
    w2_c = w2_c.astype(mxu_dtype)                                 # (K, Co_p, Co_p)
    b1_c = _pad_axis(params["conv1_b"], 0, Co_p).reshape(1, Co_p).astype(jnp.float32)
    b2_c = _pad_axis(params["conv2_b"], 0, Co_p).reshape(1, Co_p).astype(jnp.float32)

    args = [xp, w1_c, b1_c, w2_c, b2_c]
    if has_res_conv:
        wr_c = _pad_axis(jnp.transpose(params["res_w"][:, :, 0], (1, 0)), 1, Co_p)
        wr_c = wr_c.astype(mxu_dtype)                             # (Cin_k, Co_p)
        br_c = _pad_axis(params["res_b"], 0, Co_p).reshape(1, Co_p).astype(jnp.float32)
        args += [wr_c, br_c]

    flops = 2 * B * L_p * (K * Cin_k * Co_p + K * Co_p * Co_p
                           + (Cin_k * Co_p if has_res_conv else 0))
    bytes_accessed = int(sum(int(a.size) * a.dtype.itemsize for a in args)
                         + B * L_p * Co_p * 4)
    vmem_limit = int(min(48 << 20,
                         max(32 << 20,
                             int(1.5 * (_per_step_bytes(Bt) + 2 * w_bytes)))))

    kernel = functools.partial(
        _causal_conv_block_kernel, Bt=Bt, L_p=L_p, Ppad=Ppad, P=P, K=K,
        dilation=dilation, Cin_k=Cin_k, Co_p=Co_p, has_res_conv=has_res_conv,
        use_im2col=use_im2col, final_relu=final, neg_slope=negative_slope,
        mxu_dtype=mxu_dtype)

    def _call(single_buffer_consts):
        pm = {"pipeline_mode": pl.Buffered(1)} if single_buffer_consts else {}

        def const_spec(arr):
            n = arr.ndim
            return pl.BlockSpec(arr.shape, lambda b, _n=n: (0,) * _n, **pm)

        in_specs = [pl.BlockSpec((Bt, Ppad + L_p, Cin_k), lambda b: (b, 0, 0))]
        in_specs += [const_spec(a) for a in args[1:]]

        # TODO(synk): for very long L, add a time tile (grid=(B//Bt, L//Lt))
        # with a P-row halo so VMEM is bounded independently of L.
        return pl.pallas_call(
            kernel,
            grid=grid,
            in_specs=in_specs,
            out_specs=pl.BlockSpec((Bt, L_p, Co_p), lambda b: (b, 0, 0)),
            out_shape=jax.ShapeDtypeStruct((B, L_p, Co_p), jnp.float32),
            scratch_shapes=[pltpu.VMEM((Bt, Ppad + L_p, Co_p), mxu_dtype)],
            compiler_params=pltpu.CompilerParams(
                dimension_semantics=("parallel",),
                vmem_limit_bytes=vmem_limit),
            cost_estimate=pl.CostEstimate(flops=flops, transcendentals=0,
                                          bytes_accessed=bytes_accessed),
        )(*args)

    try:
        out_tm = _call(True)       # single-buffered constant weights/biases
    except Exception:              # pl.Buffered(1) unsupported on this build
        out_tm = _call(False)

    out = jnp.transpose(out_tm, (0, 2, 1))                        # (B, Co_p, L_p)
    return out[:, :Cout, :L]


def reference_forward(x, params, *, kernel_size, dilation, final=False,
                      negative_slope=0.01):
    """Pure-JAX (XLA) reproduction of CausalConvolutionBlock.forward."""
    K = kernel_size
    P = (K - 1) * dilation
    L = x.shape[2]
    w1 = _weight_norm(params["conv1_v"], params["conv1_g"])
    w2 = _weight_norm(params["conv2_v"], params["conv2_g"])

    def causal_conv(h, w, b):
        y = jax.lax.conv_general_dilated(
            h, w, window_strides=(1,), padding=[(P, P)],
            rhs_dilation=(dilation,),
            dimension_numbers=("NCH", "OIH", "NCH"))
        y = y + b[None, :, None]
        return y[:, :, :L]                                        # Chomp1d(P)

    h = jax.nn.leaky_relu(causal_conv(x, w1, params["conv1_b"]), negative_slope)
    out_causal = jax.nn.leaky_relu(causal_conv(h, w2, params["conv2_b"]),
                                   negative_slope)
    if "res_w" in params:
        res = jax.lax.conv_general_dilated(
            x, params["res_w"], window_strides=(1,), padding=[(0, 0)],
            dimension_numbers=("NCH", "OIH", "NCH"))
        res = res + params["res_b"][None, :, None]
    else:
        res = x
    out = out_causal + res
    if final:
        out = jax.nn.leaky_relu(out, negative_slope)
    return out


if __name__ == "__main__":
    key = jax.random.PRNGKey(0)
    ks = jax.random.split(key, 12)

    # ---- Case 1: in_channels != out_channels -> 1x1-conv residual, final=False.
    B, Cin, Cout, L = 8, 6, 16, 32
    K, dilation = 3, 2
    params = {
        "conv1_v": 0.3 * jax.random.normal(ks[0], (Cout, Cin, K), jnp.float32),
        "conv1_g": 1.0 + 0.1 * jax.random.normal(ks[1], (Cout, 1, 1), jnp.float32),
        "conv1_b": 0.1 * jax.random.normal(ks[2], (Cout,), jnp.float32),
        "conv2_v": 0.3 * jax.random.normal(ks[3], (Cout, Cout, K), jnp.float32),
        "conv2_g": 1.0 + 0.1 * jax.random.normal(ks[4], (Cout, 1, 1), jnp.float32),
        "conv2_b": 0.1 * jax.random.normal(ks[5], (Cout,), jnp.float32),
        "res_w": 0.3 * jax.random.normal(ks[6], (Cout, Cin, 1), jnp.float32),
        "res_b": 0.1 * jax.random.normal(ks[7], (Cout,), jnp.float32),
    }
    x = jax.random.normal(ks[8], (B, Cin, L), jnp.float32)
    ref = reference_forward(x, params, kernel_size=K, dilation=dilation,
                            final=False)

    # exact path (f32 matmul operands) -> tight check
    out_f32 = causal_convolution_block(x, params, kernel_size=K,
                                       dilation=dilation, final=False,
                                       mxu_dtype=jnp.float32)
    out_f32 = jax.block_until_ready(out_f32)
    assert out_f32.shape == (B, Cout, L)
    err = float(jnp.max(jnp.abs(out_f32 - ref)))
    assert jnp.allclose(out_f32, ref, atol=1e-5, rtol=1e-5), err

    # default path (bf16 matmul operands, f32 accumulation) -> loose check
    out_bf16 = causal_convolution_block(x, params, kernel_size=K,
                                        dilation=dilation, final=False,
                                        batch_tile=4)
    out_bf16 = jax.block_until_ready(out_bf16)
    assert out_bf16.shape == (B, Cout, L)
    err_bf16 = float(jnp.max(jnp.abs(out_bf16 - ref)))
    assert err_bf16 < 0.1, err_bf16

    # ---- Case 2: in_channels == out_channels -> identity residual, final=True.
    C2 = 16
    params2 = {
        "conv1_v": 0.3 * jax.random.normal(ks[9], (C2, C2, K), jnp.float32),
        "conv1_g": jnp.ones((C2, 1, 1), jnp.float32),
        "conv1_b": 0.1 * jax.random.normal(ks[10], (C2,), jnp.float32),
        "conv2_v": 0.3 * jax.random.normal(ks[0], (C2, C2, K), jnp.float32),
        "conv2_g": jnp.ones((C2, 1, 1), jnp.float32),
        "conv2_b": 0.1 * jax.random.normal(ks[1], (C2,), jnp.float32),
    }
    x2 = jax.random.normal(ks[11], (B, C2, L), jnp.float32)
    ref2 = reference_forward(x2, params2, kernel_size=K, dilation=1, final=True)

    out2_f32 = causal_convolution_block(x2, params2, kernel_size=K, dilation=1,
                                        final=True, mxu_dtype=jnp.float32)
    out2_f32 = jax.block_until_ready(out2_f32)
    assert out2_f32.shape == (B, C2, L)
    err2 = float(jnp.max(jnp.abs(out2_f32 - ref2)))
    assert jnp.allclose(out2_f32, ref2, atol=1e-5, rtol=1e-5), err2

    out2_bf16 = causal_convolution_block(x2, params2, kernel_size=K, dilation=1,
                                         final=True)
    out2_bf16 = jax.block_until_ready(out2_bf16)
    assert out2_bf16.shape == (B, C2, L)
    err2_bf16 = float(jnp.max(jnp.abs(out2_bf16 - ref2)))
    assert err2_bf16 < 0.1, err2_bf16

    print("KERNEL_OK")
</pallas_src>

<mosaic_0001>
module attributes {stable_mosaic.version = 11 : i64} {
  func.func @_causal_conv_block_kernel(%arg0: i32, %arg1: memref<4x40x6xf32, #tpu.memory_space<vmem>>, %arg2: memref<18x128xf32, #tpu.memory_space<vmem>>, %arg3: memref<1x128xf32, #tpu.memory_space<vmem>>, %arg4: memref<3x128x128xf32, #tpu.memory_space<vmem>>, %arg5: memref<1x128xf32, #tpu.memory_space<vmem>>, %arg6: memref<6x128xf32, #tpu.memory_space<vmem>>, %arg7: memref<1x128xf32, #tpu.memory_space<vmem>>, %arg8: memref<4x32x128xf32, #tpu.memory_space<vmem>>, %arg9: memref<4x40x128xf32, #tpu.memory_space<vmem>>) attributes {dimension_semantics = [#tpu.dimension_semantics<parallel>], iteration_bounds = array<i64: 2>, scalar_prefetch = 0 : i64, scratch_operands = 1 : i64, tpu.core_type = #tpu.core_type<tc>, window_params = [{transform_indices = @transform_0, window_bounds = array<i64: 4, 40, 6>}, {pipeline_mode = #tpu.pipeline_mode<synchronous>, transform_indices = @transform_1, window_bounds = array<i64: 18, 128>}, {pipeline_mode = #tpu.pipeline_mode<synchronous>, transform_indices = @transform_2, window_bounds = array<i64: 1, 128>}, {pipeline_mode = #tpu.pipeline_mode<synchronous>, transform_indices = @transform_3, window_bounds = array<i64: 3, 128, 128>}, {pipeline_mode = #tpu.pipeline_mode<synchronous>, transform_indices = @transform_4, window_bounds = array<i64: 1, 128>}, {pipeline_mode = #tpu.pipeline_mode<synchronous>, transform_indices = @transform_5, window_bounds = array<i64: 6, 128>}, {pipeline_mode = #tpu.pipeline_mode<synchronous>, transform_indices = @transform_6, window_bounds = array<i64: 1, 128>}, {transform_indices = @transform_7, window_bounds = array<i64: 4, 32, 128>}]} {
    %c0 = arith.constant 0 : index
    %c4 = arith.constant 4 : index
    %c0_0 = arith.constant 0 : index
    %0 = vector.load %arg1[%c0, %c4, %c0_0] : memref<4x40x6xf32, #tpu.memory_space<vmem>>, vector<4x32x6xf32>
    %c0_1 = arith.constant 0 : index
    %c6 = arith.constant 6 : index
    %c0_2 = arith.constant 0 : index
    %1 = vector.load %arg1[%c0_1, %c6, %c0_2] : memref<4x40x6xf32, #tpu.memory_space<vmem>>, vector<4x32x6xf32>
    %c0_3 = arith.constant 0 : index
    %c8 = arith.constant 8 : index
    %c0_4 = arith.constant 0 : index
    %2 = vector.load %arg1[%c0_3, %c8, %c0_4] : memref<4x40x6xf32, #tpu.memory_space<vmem>>, vector<4x32x6xf32>
    %3 = tpu.concatenate %0, %1, %2 in 2 : vector<4x32x6xf32>, vector<4x32x6xf32>, vector<4x32x6xf32> -> vector<4x32x18xf32>
    %4 = vector.shape_cast %3 : vector<4x32x18xf32> to vector<128x18xf32>
    %c0_5 = arith.constant 0 : index
    %c0_6 = arith.constant 0 : index
    %5 = vector.load %arg2[%c0_5, %c0_6] : memref<18x128xf32, #tpu.memory_space<vmem>>, vector<18x128xf32>
    %cst = arith.constant dense<0.000000e+00> : vector<128x128xf32>
    %6 = tpu.matmul %4, %5, %cst {dimension_numbers = #tpu.dot_dimension_numbers<[1], [0], [0], [1], [0, 0, 1, 1], [], []>} : vector<128x18xf32>, vector<18x128xf32>, vector<128x128xf32> -> vector<128x128xf32>
    %c0_7 = arith.constant 0 : index
    %c0_8 = arith.constant 0 : index
    %7 = vector.load %arg3[%c0_7, %c0_8] : memref<1x128xf32, #tpu.memory_space<vmem>>, vector<1x128xf32>
    %8 = vector.broadcast %7 : vector<1x128xf32> to vector<128x128xf32>
    %9 = arith.addf %6, %8 : vector<128x128xf32>
    %cst_9 = arith.constant 0.00999999977 : f32
    %cst_10 = arith.constant 0.000000e+00 : f32
    %10 = vector.broadcast %cst_10 : f32 to vector<128x128xf32>
    %11 = arith.cmpf oge, %9, %10 : vector<128x128xf32>
    %12 = vector.broadcast %cst_9 : f32 to vector<128x128xf32>
    %13 = arith.mulf %12, %9 : vector<128x128xf32>
    %14 = arith.select %11, %9, %13 : vector<128x128xi1>, vector<128x128xf32>
    %cst_11 = arith.constant 0.000000e+00 : f32
    %15 = vector.broadcast %cst_11 : f32 to vector<4x8x128xf32>
    %c0_12 = arith.constant 0 : index
    %c0_13 = arith.constant 0 : index
    %c0_14 = arith.constant 0 : index
    %16 = vector.load %arg9[%c0_12, %c0_13, %c0_14] : memref<4x40x128xf32, #tpu.memory_space<vmem>>, vector<4x8x128xf32>
    tpu.vector_store %arg9[%c0_12, %c0_13, %c0_14], %15 {strides = array<i32>} : memref<4x40x128xf32, #tpu.memory_space<vmem>>, vector<4x8x128xf32>,
    %17 = vector.shape_cast %14 : vector<128x128xf32> to vector<4x32x128xf32>
    %c0_15 = arith.constant 0 : index
    %c8_16 = arith.constant 8 : index
    %c0_17 = arith.constant 0 : index
    %18 = vector.load %arg9[%c0_15, %c8_16, %c0_17] : memref<4x40x128xf32, #tpu.memory_space<vmem>>, vector<4x32x128xf32>
    tpu.vector_store %arg9[%c0_15, %c8_16, %c0_17], %17 {strides = array<i32>} : memref<4x40x128xf32, #tpu.memory_space<vmem>>, vector<4x32x128xf32>,
    %cst_18 = arith.constant 0.000000e+00 : f32
    %19 = vector.broadcast %cst_18 : f32 to vector<128x128xf32>
    %c0_19 = arith.constant 0 : index
    %c4_20 = arith.constant 4 : index
    %c0_21 = arith.constant 0 : index
    %20 = vector.load %arg9[%c0_19, %c4_20, %c0_21] : memref<4x40x128xf32, #tpu.memory_space<vmem>>, vector<4x32x128xf32>
    %21 = vector.shape_cast %20 : vector<4x32x128xf32> to vector<128x128xf32>
    %c0_22 = arith.constant 0 : index
    %c0_23 = arith.constant 0 : index
    %c0_24 = arith.constant 0 : index
    %22 = vector.load %arg4[%c0_22, %c0_23, %c0_24] : memref<3x128x128xf32, #tpu.memory_space<vmem>>, vector<1x128x128xf32>
    %23 = vector.shape_cast %22 : vector<1x128x128xf32> to vector<128x128xf32>
    %cst_25 = arith.constant dense<0.000000e+00> : vector<128x128xf32>
    %24 = tpu.matmul %21, %23, %cst_25 {dimension_numbers = #tpu.dot_dimension_numbers<[1], [0], [0], [1], [0, 0, 1, 1], [], []>} : vector<128x128xf32>, vector<128x128xf32>, vector<128x128xf32> -> vector<128x128xf32>
    %25 = arith.addf %19, %24 : vector<128x128xf32>
    %c0_26 = arith.constant 0 : index
    %c6_27 = arith.constant 6 : index
    %c0_28 = arith.constant 0 : index
    %26 = vector.load %arg9[%c0_26, %c6_27, %c0_28] : memref<4x40x128xf32, #tpu.memory_space<vmem>>, vector<4x32x128xf32>
    %27 = vector.shape_cast %26 : vector<4x32x128xf32> to vector<128x128xf32>
    %c1 = arith.constant 1 : index
    %c0_29 = arith.constant 0 : index
    %c0_30 = arith.constant 0 : index
    %28 = vector.load %arg4[%c1, %c0_29, %c0_30] : memref<3x128x128xf32, #tpu.memory_space<vmem>>, vector<1x128x128xf32>
    %29 = vector.shape_cast %28 : vector<1x128x128xf32> to vector<128x128xf32>
    %cst_31 = arith.constant dense<0.000000e+00> : vector<128x128xf32>
    %30 = tpu.matmul %27, %29, %cst_31 {dimension_numbers = #tpu.dot_dimension_numbers<[1], [0], [0], [1], [0, 0, 1, 1], [], []>} : vector<128x128xf32>, vector<128x128xf32>, vector<128x128xf32> -> vector<128x128xf32>
    %31 = arith.addf %25, %30 : vector<128x128xf32>
    %c0_32 = arith.constant 0 : index
    %c8_33 = arith.constant 8 : index
    %c0_34 = arith.constant 0 : index
    %32 = vector.load %arg9[%c0_32, %c8_33, %c0_34] : memref<4x40x128xf32, #tpu.memory_space<vmem>>, vector<4x32x128xf32>
    %33 = vector.shape_cast %32 : vector<4x32x128xf32> to vector<128x128xf32>
    %c2 = arith.constant 2 : index
    %c0_35 = arith.constant 0 : index
    %c0_36 = arith.constant 0 : index
    %34 = vector.load %arg4[%c2, %c0_35, %c0_36] : memref<3x128x128xf32, #tpu.memory_space<vmem>>, vector<1x128x128xf32>
    %35 = vector.shape_cast %34 : vector<1x128x128xf32> to vector<128x128xf32>
    %cst_37 = arith.constant dense<0.000000e+00> : vector<128x128xf32>
    %36 = tpu.matmul %33, %35, %cst_37 {dimension_numbers = #tpu.dot_dimension_numbers<[1], [0], [0], [1], [0, 0, 1, 1], [], []>} : vector<128x128xf32>, vector<128x128xf32>, vector<128x128xf32> -> vector<128x128xf32>
    %37 = arith.addf %31, %36 : vector<128x128xf32>
    %c0_38 = arith.constant 0 : index
    %c0_39 = arith.constant 0 : index
    %38 = vector.load %arg5[%c0_38, %c0_39] : memref<1x128xf32, #tpu.memory_space<vmem>>, vector<1x128xf32>
    %39 = vector.broadcast %38 : vector<1x128xf32> to vector<128x128xf32>
    %40 = arith.addf %37, %39 : vector<128x128xf32>
    %cst_40 = arith.constant 0.00999999977 : f32
    %cst_41 = arith.constant 0.000000e+00 : f32
    %41 = vector.broadcast %cst_41 : f32 to vector<128x128xf32>
    %42 = arith.cmpf oge, %40, %41 : vector<128x128xf32>
    %43 = vector.broadcast %cst_40 : f32 to vector<128x128xf32>
    %44 = arith.mulf %43, %40 : vector<128x128xf32>
    %45 = arith.select %42, %40, %44 : vector<128x128xi1>, vector<128x128xf32>
    %c0_42 = arith.constant 0 : index
    %c8_43 = arith.constant 8 : index
    %c0_44 = arith.constant 0 : index
    %46 = vector.load %arg1[%c0_42, %c8_43, %c0_44] : memref<4x40x6xf32, #tpu.memory_space<vmem>>, vector<4x32x6xf32>
    %47 = vector.shape_cast %46 : vector<4x32x6xf32> to vector<128x6xf32>
    %c0_45 = arith.constant 0 : index
    %c0_46 = arith.constant 0 : index
    %48 = vector.load %arg6[%c0_45, %c0_46] : memref<6x128xf32, #tpu.memory_space<vmem>>, vector<6x128xf32>
    %cst_47 = arith.constant dense<0.000000e+00> : vector<128x128xf32>
    %49 = tpu.matmul %47, %48, %cst_47 {dimension_numbers = #tpu.dot_dimension_numbers<[1], [0], [0], [1], [0, 0, 1, 1], [], []>} : vector<128x6xf32>, vector<6x128xf32>, vector<128x128xf32> -> vector<128x128xf32>
    %c0_48 = arith.constant 0 : index
    %c0_49 = arith.constant 0 : index
    %50 = vector.load %arg7[%c0_48, %c0_49] : memref<1x128xf32, #tpu.memory_space<vmem>>, vector<1x128xf32>
    %51 = vector.broadcast %50 : vector<1x128xf32> to vector<128x128xf32>
    %52 = arith.addf %49, %51 : vector<128x128xf32>
    %53 = arith.addf %45, %52 : vector<128x128xf32>
    %54 = vector.shape_cast %53 : vector<128x128xf32> to vector<4x32x128xf32>
    %c0_50 = arith.constant 0 : index
    %c0_51 = arith.constant 0 : index
    %c0_52 = arith.constant 0 : index
    %55 = vector.load %arg8[%c0_50, %c0_51, %c0_52] : memref<4x32x128xf32, #tpu.memory_space<vmem>>, vector<4x32x128xf32>
    tpu.vector_store %arg8[%c0_50, %c0_51, %c0_52], %54 {strides = array<i32>} : memref<4x32x128xf32, #tpu.memory_space<vmem>>, vector<4x32x128xf32>,
    return
  }
  func.func @transform_0(%arg0: i32) -> (i32, i32, i32) {
    %c0_i32 = arith.constant 0 : i32
    %c0_i32_0 = arith.constant 0 : i32
    %c0_i32_1 = arith.constant 0 : i32
    return %arg0, %c0_i32, %c0_i32_0 : i32, i32, i32
  }
  func.func @transform_1(%arg0: i32) -> (i32, i32) {
    %c0_i32 = arith.constant 0 : i32
    %c0_i32_0 = arith.constant 0 : i32
    %c0_i32_1 = arith.constant 0 : i32
    return %c0_i32, %c0_i32_0 : i32, i32
  }
  func.func @transform_2(%arg0: i32) -> (i32, i32) {
    %c0_i32 = arith.constant 0 : i32
    %c0_i32_0 = arith.constant 0 : i32
    %c0_i32_1 = arith.constant 0 : i32
    return %c0_i32, %c0_i32_0 : i32, i32
  }
  func.func @transform_3(%arg0: i32) -> (i32, i32, i32) {
    %c0_i32 = arith.constant 0 : i32
    %c0_i32_0 = arith.constant 0 : i32
    %c0_i32_1 = arith.constant 0 : i32
    %c0_i32_2 = arith.constant 0 : i32
    return %c0_i32, %c0_i32_0, %c0_i32_1 : i32, i32, i32
  }
  func.func @transform_4(%arg0: i32) -> (i32, i32) {
    %c0_i32 = arith.constant 0 : i32
    %c0_i32_0 = arith.constant 0 : i32
    %c0_i32_1 = arith.constant 0 : i32
    return %c0_i32, %c0_i32_0 : i32, i32
  }
  func.func @transform_5(%arg0: i32) -> (i32, i32) {
    %c0_i32 = arith.constant 0 : i32
    %c0_i32_0 = arith.constant 0 : i32
    %c0_i32_1 = arith.constant 0 : i32
    return %c0_i32, %c0_i32_0 : i32, i32
  }
  func.func @transform_6(%arg0: i32) -> (i32, i32) {
    %c0_i32 = arith.constant 0 : i32
    %c0_i32_0 = arith.constant 0 : i32
    %c0_i32_1 = arith.constant 0 : i32
    return %c0_i32, %c0_i32_0 : i32, i32
  }
  func.func @transform_7(%arg0: i32) -> (i32, i32, i32) {
    %c0_i32 = arith.constant 0 : i32
    %c0_i32_0 = arith.constant 0 : i32
    %c0_i32_1 = arith.constant 0 : i32
    return %arg0, %c0_i32, %c0_i32_0 : i32, i32, i32
  }
}

module attributes {stable_mosaic.version = 11 : i64} {
  func.func @_causal_conv_block_kernel(%arg0: i32, %arg1: memref<4x40x6xf32, #tpu.memory_space<vmem>>, %arg2: memref<18x128xf32, #tpu.memory_space<vmem>>, %arg3: memref<1x128xf32, #tpu.memory_space<vmem>>, %arg4: memref<3x128x128xf32, #tpu.memory_space<vmem>>, %arg5: memref<1x128xf32, #tpu.memory_space<vmem>>, %arg6: memref<6x128xf32, #tpu.memory_space<vmem>>, %arg7: memref<1x128xf32, #tpu.memory_space<vmem>>, %arg8: memref<4x32x128xf32, #tpu.memory_space<vmem>>, %arg9: memref<4x40x128xf32, #tpu.memory_space<vmem>>) attributes {dimension_semantics = [#tpu.dimension_semantics<parallel>], iteration_bounds = array<i64: 2>, scalar_prefetch = 0 : i64, scratch_operands = 1 : i64, tpu.core_type = #tpu.core_type<tc>, window_params = [{transform_indices = @transform_0, window_bounds = array<i64: 4, 40, 6>}, {pipeline_mode = #tpu.pipeline_mode<synchronous>, transform_indices = @transform_1, window_bounds = array<i64: 18, 128>}, {pipeline_mode = #tpu.pipeline_mode<synchronous>, transform_indices = @transform_2, window_bounds = array<i64: 1, 128>}, {pipeline_mode = #tpu.pipeline_mode<synchronous>, transform_indices = @transform_3, window_bounds = array<i64: 3, 128, 128>}, {pipeline_mode = #tpu.pipeline_mode<synchronous>, transform_indices = @transform_4, window_bounds = array<i64: 1, 128>}, {pipeline_mode = #tpu.pipeline_mode<synchronous>, transform_indices = @transform_5, window_bounds = array<i64: 6, 128>}, {pipeline_mode = #tpu.pipeline_mode<synchronous>, transform_indices = @transform_6, window_bounds = array<i64: 1, 128>}, {transform_indices = @transform_7, window_bounds = array<i64: 4, 32, 128>}]} {
    %c0 = arith.constant 0 : index
    %c4 = arith.constant 4 : index
    %c0_0 = arith.constant 0 : index
    %0 = vector.load %arg1[%c0, %c4, %c0_0] : memref<4x40x6xf32, #tpu.memory_space<vmem>>, vector<4x32x6xf32>
    %c0_1 = arith.constant 0 : index
    %c6 = arith.constant 6 : index
    %c0_2 = arith.constant 0 : index
    %1 = vector.load %arg1[%c0_1, %c6, %c0_2] : memref<4x40x6xf32, #tpu.memory_space<vmem>>, vector<4x32x6xf32>
    %c0_3 = arith.constant 0 : index
    %c8 = arith.constant 8 : index
    %c0_4 = arith.constant 0 : index
    %2 = vector.load %arg1[%c0_3, %c8, %c0_4] : memref<4x40x6xf32, #tpu.memory_space<vmem>>, vector<4x32x6xf32>
    %3 = tpu.concatenate %0, %1, %2 in 2 : vector<4x32x6xf32>, vector<4x32x6xf32>, vector<4x32x6xf32> -> vector<4x32x18xf32>
    %4 = vector.shape_cast %3 : vector<4x32x18xf32> to vector<128x18xf32>
    %c0_5 = arith.constant 0 : index
    %c0_6 = arith.constant 0 : index
    %5 = vector.load %arg2[%c0_5, %c0_6] : memref<18x128xf32, #tpu.memory_space<vmem>>, vector<18x128xf32>
    %cst = arith.constant dense<0.000000e+00> : vector<128x128xf32>
    %6 = tpu.matmul %4, %5, %cst {dimension_numbers = #tpu.dot_dimension_numbers<[1], [0], [0], [1], [0, 0, 1, 1], [], []>} : vector<128x18xf32>, vector<18x128xf32>, vector<128x128xf32> -> vector<128x128xf32>
    %c0_7 = arith.constant 0 : index
    %c0_8 = arith.constant 0 : index
    %7 = vector.load %arg3[%c0_7, %c0_8] : memref<1x128xf32, #tpu.memory_space<vmem>>, vector<1x128xf32>
    %8 = vector.broadcast %7 : vector<1x128xf32> to vector<128x128xf32>
    %9 = arith.addf %6, %8 : vector<128x128xf32>
    %cst_9 = arith.constant 0.00999999977 : f32
    %cst_10 = arith.constant 0.000000e+00 : f32
    %10 = vector.broadcast %cst_10 : f32 to vector<128x128xf32>
    %11 = arith.cmpf oge, %9, %10 : vector<128x128xf32>
    %12 = vector.broadcast %cst_9 : f32 to vector<128x128xf32>
    %13 = arith.mulf %12, %9 : vector<128x128xf32>
    %14 = arith.select %11, %9, %13 : vector<128x128xi1>, vector<128x128xf32>
    %cst_11 = arith.constant 0.000000e+00 : f32
    %15 = vector.broadcast %cst_11 : f32 to vector<4x8x128xf32>
    %c0_12 = arith.constant 0 : index
    %c0_13 = arith.constant 0 : index
    %c0_14 = arith.constant 0 : index
    %16 = vector.load %arg9[%c0_12, %c0_13, %c0_14] : memref<4x40x128xf32, #tpu.memory_space<vmem>>, vector<4x8x128xf32>
    tpu.vector_store %arg9[%c0_12, %c0_13, %c0_14], %15 {strides = array<i32>} : memref<4x40x128xf32, #tpu.memory_space<vmem>>, vector<4x8x128xf32>,
    %17 = vector.shape_cast %14 : vector<128x128xf32> to vector<4x32x128xf32>
    %c0_15 = arith.constant 0 : index
    %c8_16 = arith.constant 8 : index
    %c0_17 = arith.constant 0 : index
    %18 = vector.load %arg9[%c0_15, %c8_16, %c0_17] : memref<4x40x128xf32, #tpu.memory_space<vmem>>, vector<4x32x128xf32>
    tpu.vector_store %arg9[%c0_15, %c8_16, %c0_17], %17 {strides = array<i32>} : memref<4x40x128xf32, #tpu.memory_space<vmem>>, vector<4x32x128xf32>,
    %cst_18 = arith.constant 0.000000e+00 : f32
    %19 = vector.broadcast %cst_18 : f32 to vector<128x128xf32>
    %c0_19 = arith.constant 0 : index
    %c4_20 = arith.constant 4 : index
    %c0_21 = arith.constant 0 : index
    %20 = vector.load %arg9[%c0_19, %c4_20, %c0_21] : memref<4x40x128xf32, #tpu.memory_space<vmem>>, vector<4x32x128xf32>
    %21 = vector.shape_cast %20 : vector<4x32x128xf32> to vector<128x128xf32>
    %c0_22 = arith.constant 0 : index
    %c0_23 = arith.constant 0 : index
    %c0_24 = arith.constant 0 : index
    %22 = vector.load %arg4[%c0_22, %c0_23, %c0_24] : memref<3x128x128xf32, #tpu.memory_space<vmem>>, vector<1x128x128xf32>
    %23 = vector.shape_cast %22 : vector<1x128x128xf32> to vector<128x128xf32>
    %cst_25 = arith.constant dense<0.000000e+00> : vector<128x128xf32>
    %24 = tpu.matmul %21, %23, %cst_25 {dimension_numbers = #tpu.dot_dimension_numbers<[1], [0], [0], [1], [0, 0, 1, 1], [], []>} : vector<128x128xf32>, vector<128x128xf32>, vector<128x128xf32> -> vector<128x128xf32>
    %25 = arith.addf %19, %24 : vector<128x128xf32>
    %c0_26 = arith.constant 0 : index
    %c6_27 = arith.constant 6 : index
    %c0_28 = arith.constant 0 : index
    %26 = vector.load %arg9[%c0_26, %c6_27, %c0_28] : memref<4x40x128xf32, #tpu.memory_space<vmem>>, vector<4x32x128xf32>
    %27 = vector.shape_cast %26 : vector<4x32x128xf32> to vector<128x128xf32>
    %c1 = arith.constant 1 : index
    %c0_29 = arith.constant 0 : index
    %c0_30 = arith.constant 0 : index
    %28 = vector.load %arg4[%c1, %c0_29, %c0_30] : memref<3x128x128xf32, #tpu.memory_space<vmem>>, vector<1x128x128xf32>
    %29 = vector.shape_cast %28 : vector<1x128x128xf32> to vector<128x128xf32>
    %cst_31 = arith.constant dense<0.000000e+00> : vector<128x128xf32>
    %30 = tpu.matmul %27, %29, %cst_31 {dimension_numbers = #tpu.dot_dimension_numbers<[1], [0], [0], [1], [0, 0, 1, 1], [], []>} : vector<128x128xf32>, vector<128x128xf32>, vector<128x128xf32> -> vector<128x128xf32>
    %31 = arith.addf %25, %30 : vector<128x128xf32>
    %c0_32 = arith.constant 0 : index
    %c8_33 = arith.constant 8 : index
    %c0_34 = arith.constant 0 : index
    %32 = vector.load %arg9[%c0_32, %c8_33, %c0_34] : memref<4x40x128xf32, #tpu.memory_space<vmem>>, vector<4x32x128xf32>
    %33 = vector.shape_cast %32 : vector<4x32x128xf32> to vector<128x128xf32>
    %c2 = arith.constant 2 : index
    %c0_35 = arith.constant 0 : index
    %c0_36 = arith.constant 0 : index
    %34 = vector.load %arg4[%c2, %c0_35, %c0_36] : memref<3x128x128xf32, #tpu.memory_space<vmem>>, vector<1x128x128xf32>
    %35 = vector.shape_cast %34 : vector<1x128x128xf32> to vector<128x128xf32>
    %cst_37 = arith.constant dense<0.000000e+00> : vector<128x128xf32>
    %36 = tpu.matmul %33, %35, %cst_37 {dimension_numbers = #tpu.dot_dimension_numbers<[1], [0], [0], [1], [0, 0, 1, 1], [], []>} : vector<128x128xf32>, vector<128x128xf32>, vector<128x128xf32> -> vector<128x128xf32>
    %37 = arith.addf %31, %36 : vector<128x128xf32>
    %c0_38 = arith.constant 0 : index
    %c0_39 = arith.constant 0 : index
    %38 = vector.load %arg5[%c0_38, %c0_39] : memref<1x128xf32, #tpu.memory_space<vmem>>, vector<1x128xf32>
    %39 = vector.broadcast %38 : vector<1x128xf32> to vector<128x128xf32>
    %40 = arith.addf %37, %39 : vector<128x128xf32>
    %cst_40 = arith.constant 0.00999999977 : f32
    %cst_41 = arith.constant 0.000000e+00 : f32
    %41 = vector.broadcast %cst_41 : f32 to vector<128x128xf32>
    %42 = arith.cmpf oge, %40, %41 : vector<128x128xf32>
    %43 = vector.broadcast %cst_40 : f32 to vector<128x128xf32>
    %44 = arith.mulf %43, %40 : vector<128x128xf32>
    %45 = arith.select %42, %40, %44 : vector<128x128xi1>, vector<128x128xf32>
    %c0_42 = arith.constant 0 : index
    %c8_43 = arith.constant 8 : index
    %c0_44 = arith.constant 0 : index
    %46 = vector.load %arg1[%c0_42, %c8_43, %c0_44] : memref<4x40x6xf32, #tpu.memory_space<vmem>>, vector<4x32x6xf32>
    %47 = vector.shape_cast %46 : vector<4x32x6xf32> to vector<128x6xf32>
    %c0_45 = arith.constant 0 : index
    %c0_46 = arith.constant 0 : index
    %48 = vector.load %arg6[%c0_45, %c0_46] : memref<6x128xf32, #tpu.memory_space<vmem>>, vector<6x128xf32>
    %cst_47 = arith.constant dense<0.000000e+00> : vector<128x128xf32>
    %49 = tpu.matmul %47, %48, %cst_47 {dimension_numbers = #tpu.dot_dimension_numbers<[1], [0], [0], [1], [0, 0, 1, 1], [], []>} : vector<128x6xf32>, vector<6x128xf32>, vector<128x128xf32> -> vector<128x128xf32>
    %c0_48 = arith.constant 0 : index
    %c0_49 = arith.constant 0 : index
    %50 = vector.load %arg7[%c0_48, %c0_49] : memref<1x128xf32, #tpu.memory_space<vmem>>, vector<1x128xf32>
    %51 = vector.broadcast %50 : vector<1x128xf32> to vector<128x128xf32>
    %52 = arith.addf %49, %51 : vector<128x128xf32>
    %53 = arith.addf %45, %52 : vector<128x128xf32>
    %54 = vector.shape_cast %53 : vector<128x128xf32> to vector<4x32x128xf32>
    %c0_50 = arith.constant 0 : index
    %c0_51 = arith.constant 0 : index
    %c0_52 = arith.constant 0 : index
    %55 = vector.load %arg8[%c0_50, %c0_51, %c0_52] : memref<4x32x128xf32, #tpu.memory_space<vmem>>, vector<4x32x128xf32>
    tpu.vector_store %arg8[%c0_50, %c0_51, %c0_52], %54 {strides = array<i32>} : memref<4x32x128xf32, #tpu.memory_space<vmem>>, vector<4x32x128xf32>,
    return
  }
  func.func @transform_0(%arg0: i32) -> (i32, i32, i32) {
    %c0_i32 = arith.constant 0 : i32
    %c0_i32_0 = arith.constant 0 : i32
    %c0_i32_1 = arith.constant 0 : i32
    return %arg0, %c0_i32, %c0_i32_0 : i32, i32, i32
  }
  func.func @transform_1(%arg0: i32) -> (i32, i32) {
    %c0_i32 = arith.constant 0 : i32
    %c0_i32_0 = arith.constant 0 : i32
    %c0_i32_1 = arith.constant 0 : i32
    return %c0_i32, %c0_i32_0 : i32, i32
  }
  func.func @transform_2(%arg0: i32) -> (i32, i32) {
    %c0_i32 = arith.constant 0 : i32
    %c0_i32_0 = arith.constant 0 : i32
    %c0_i32_1 = arith.constant 0 : i32
    return %c0_i32, %c0_i32_0 : i32, i32
  }
  func.func @transform_3(%arg0: i32) -> (i32, i32, i32) {
    %c0_i32 = arith.constant 0 : i32
    %c0_i32_0 = arith.constant 0 : i32
    %c0_i32_1 = arith.constant 0 : i32
    %c0_i32_2 = arith.constant 0 : i32
    return %c0_i32, %c0_i32_0, %c0_i32_1 : i32, i32, i32
  }
  func.func @transform_4(%arg0: i32) -> (i32, i32) {
    %c0_i32 = arith.constant 0 : i32
    %c0_i32_0 = arith.constant 0 : i32
    %c0_i32_1 = arith.constant 0 : i32
    return %c0_i32, %c0_i32_0 : i32, i32
  }
  func.func @transform_5(%arg0: i32) -> (i32, i32) {
    %c0_i32 = arith.constant 0 : i32
    %c0_i32_0 = arith.constant 0 : i32
    %c0_i32_1 = arith.constant 0 : i32
    return %c0_i32, %c0_i32_0 : i32, i32
  }
  func.func @transform_6(%arg0: i32) -> (i32, i32) {
    %c0_i32 = arith.constant 0 : i32
    %c0_i32_0 = arith.constant 0 : i32
    %c0_i32_1 = arith.constant 0 : i32
    return %c0_i32, %c0_i32_0 : i32, i32
  }
  func.func @transform_7(%arg0: i32) -> (i32, i32, i32) {
    %c0_i32 = arith.constant 0 : i32
    %c0_i32_0 = arith.constant 0 : i32
    %c0_i32_1 = arith.constant 0 : i32
    return %arg0, %c0_i32, %c0_i32_0 : i32, i32, i32
  }
}

</mosaic_0001>

<bundles_post_ra>
// kernel: tpu_custom_call.1
= control target key start
LH: loop header
LB: loop body
LE: loop exit
PB: predicated region body
PF: predicated region fallthrough
CT: control target
= control target key end

     0   :  { %12 = vsyncpa [#allocation4], 0  ;;  %s2010_s0 = inlined_call_operand.vmem [shape: f32[8,40,6], index: 0, kind: input, shape index: {}]   ;;  %s2011_s1 = inlined_call_operand.vmem [shape: f32[18,128], index: 1, kind: input, shape index: {}]   ;;  %s2012_s2 = inlined_call_operand.vmem [shape: f32[1,128], index: 2, kind: input, shape index: {}]   ;;  %s2013_s3 = inlined_call_operand.hbm [shape: f32[3,128,128], index: 3, kind: input, shape index: {}]   ;;  %s2014_s4 = inlined_call_operand.vmem [shape: f32[1,128], index: 4, kind: input, shape index: {}]   ;;  %s2015_s5 = inlined_call_operand.vmem [shape: f32[6,128], index: 5, kind: input, shape index: {}]   ;;  %s2016_s6 = inlined_call_operand.vmem [shape: f32[1,128], index: 6, kind: input, shape index: {}]   ;;  %s2017_s7 = inlined_call_operand.hbm [shape: f32[8,32,128], index: 7, kind: output, shape index: {}]  }
   0x1   :  { %13 = vsyncpa [#allocation5], 0 }
   0x2   :  { %15 = vsyncpa [#allocation5 + $0x1], 0  ;;  %s1608_s24 = smov 0   ;;  %s1610_s25 = smov 0  }
   0x3   :  { %s1612_s26 = smov 0   ;;  %s1614_s27 = smov 0  }
   0x4 LB: > { %s1629_s28 = sadd.s32 4294967295, %s1558_s27   ;;  %s1341_s29 = sadd.s32 4294967294, %s1558_s27   ;;  %s1558_s27 = sphi %s1614_s27, %s2023_s27   ;;  %s1554_s26 = sphi %s1612_s26, %s2022_s26   ;;  %s1550_s25 = sphi %s1610_s25, %s2021_s25   ;;  %s1546_s24 = sphi %s1608_s24, %s2020_s24  }
   0x5   : > { %s1633_s30 = sadd.s32 1, %s1558_s27   ;;  %s180_s8 = sadd.s32 1, %s1554_s26 }
   0x6   : > { %s177_s9 = ssub.s32 %s1558_s27, %s1633_s30  ;;  %p190_p0 = scmp.ne.s32.totalorder %s1554_s26, %s1550_s25 }
   0x7   : > { %p178_p1 = scmp.eq.s32.totalorder %s177_s9, 0  ;;  %p191_p2 = scmp.eq.s32.totalorder %s1629_s28, 1 }
   0x8   : > { %p196_p3 = scmp.ne.s32.totalorder %s1550_s25, %s1546_s24  ;;  %p197_p4 = scmp.eq.s32.totalorder %s1341_s29, 1 }
   0x9   : > { %s1644_s10 = scalar_select %p178_p1, %s1554_s26, %s180_s8  }
   0xa   : > { %p1646_p5 = por %p191_p2, %p190_p0  ;;  %p1650_p6 = por %p197_p4, %p196_p3 }
   0xb   : > { %p1342_p7 = scmp.ge.s32.totalorder %s1558_s27, 1  ;;  %p204_p8 = scmp.lt.s32.totalorder %s1558_s27, 3 }
   0xc   : > { %p1416_p9 = scmp.eq.s32.totalorder %s1629_s28, 0  ;;  %s221_s15 = sshll.u32 %s2013_s3, 4  ;;  %s222_s15 = int_to_ptr.hbm [resolvable:$true] %s221_s15 }
   0xd   : > { %p205_p10 = pnand %p1342_p7, %p204_p8  ;;  %s1560_s16 = smov [#allocation3]  }
   0xe   : > { %s223_s17 = sshll.u32 %s1560_s16, 4  ;;  %s1561_s18 = smov 128   ;;  %s224_s17 = int_to_ptr.vmem [resolvable:$true] %s223_s17 }
   0xf   : > { %p1408_p11 = pneg %p205_p10  ;;  %s1562_s19 = smov 8  }
  0x10   : > { %258 = sbr.rel (%p205_p10) target bundleno = 561 (0x231), region = 48 }
  0x11   : > { %p1409_p12 = pnand %p1416_p9, %p1408_p11 }
  0x13   : > { %1411 = dma.hbm_to_vmem [thread:$0]  (!%p1409_p12), %s222_s15, 6144, %s224_s17, [#allocation4], %s1561_s18, %s1561_s18, %s1562_s19  }
  0x15   : > { %1537 = dma.done.wait (%p1416_p9), [#allocation4], 6144  }
  0x16   : > { %1539 = vsyncadd (%p1416_p9), [#allocation4], 4294961152  ;;  %s1348_s20 = sshll.u32 %s1629_s28, 2  ;;  %s1563_s8 = smov 6   ;;  %v512_v30 = vld [vmem:[%s2011_s1 + $0x10] sm:$0x3] }
  0x17   : > { %p293_p13 = scmp.lt.s32.totalorder %s1348_s20, 7  ;;  %s1564_s9 = smov 12   ;;  %vm566_vm0 = vcmask 1041408   ;;  %v511_v32 = vld [vmem:[%s2011_s1 + $0x8] sm:$0xff]  ;;  %v510_v33 = vld [vmem:[%s2011_s1] sm:$0xff]  ;;  %vm476_vm1 = vcmask 48128  }
  0x18   : > { %1350 = vmatpush.msk.msra.mxu0 %vm566_vm0, %v512_v30  ;;  %1392 = vmatpush.msk.msra.mxu1 %vm566_vm0, %v512_v30  ;;  %vm493_vm2 = vcmask 97280   ;;  %vm517_vm3 = vcmask 146432   ;;  %vm1149_vm4 = vcmask 1045504   ;;  %s289_s13 = sand.u32 1, %s1550_s25   ;;  %s1391_s16 = sshll.u32 %s1629_s28, 7 }
  0x19   : > { %s2025_s20 = smov (!%p293_p13, %s1348_s20), 7  ;;  %1393 = vmatpush.msk.msra.mxu2 %vm566_vm0, %v512_v30  ;;  %1394 = vmatpush.msk.msra.mxu3 %vm566_vm0, %v512_v30  ;;  %s1347_s14 = sshll.u32 %s289_s13, 7 }
  0x1a   : > { %s1401_s21 = smul.u32 40, %s2025_s20  ;;  %584 = vmatpush.msra.mxu0 %v511_v32  ;;  %1395 = vmatpush.msra.mxu1 %v511_v32  ;;  %s1928_s15 = scalar_lea.vmem [#allocation6], %s1347_s14 }
  0x1b   : > { %1396 = vmatpush.msra.mxu2 %v511_v32  ;;  %1397 = vmatpush.msra.mxu3 %v511_v32  ;;  %s1263_s19 = scalar_lea.hbm %s2017_s7, %s1391_s16  ;;  %s1264_s20 = sshll.u32 %s1928_s15, 4  ;;  %s1265_s20 = int_to_ptr.vmem [resolvable:$true] %s1264_s20 }
  0x1c   : > { %s1670_s29 = scalar_lea.vmem %s2010_s0, %s1401_s21  ;;  %585 = vmatpush.msra.mxu0 %v510_v33  ;;  %1398 = vmatpush.msra.mxu1 %v510_v33  ;;  %s1266_s28 = sshll.u32 %s1263_s19, 4  ;;  %s1267_s28 = int_to_ptr.hbm [resolvable:$true] %s1266_s28 }
  0x1d   : > { %v316_v0 = vld [vmem:[%s1670_s29 + $0x6] sm:$0xff]  ;;  %v317_v1 = vld [vmem:[%s1670_s29 + $0xe] sm:$0xff]  ;;  %v318_v2 = vld [vmem:[%s1670_s29 + $0x16] sm:$0xff]  ;;  %1399 = vmatpush.msra.mxu2 %v510_v33  ;;  %1400 = vmatpush.msra.mxu3 %v510_v33  ;;  %s1251_s21 = scalar_lea.sflag [#allocation5], %s289_s13  ;;  %s1506_s22 = sshra.s32 %s1267_s28, 4  ;;  %s1507_s22 = int_to_ptr.hbm [resolvable:$true] %s1506_s22 }
  0x1e   : > { %364 = vrot.lane.b32.xlu0 %v316_v0, %s1563_s8  ;;  %366 = vrot.lane.b32.xlu1 %v317_v1, %s1563_s8  ;;  %v1679_v3 = vld [vmem:[%s1670_s29 + $0x8] sm:$0xff]  ;;  %v1682_v4 = vld [vmem:[%s1670_s29 + $0x10] sm:$0xff]  ;;  %s1508_s23 = scalar_lea.hbm %s1507_s22, 128  ;;  %p1513_p3 = scmp.lt.s32.totalorder %s1507_s22, %s2017_s7 }
  0x1f   : > { %368 = vrot.lane.b32.xlu2 %v318_v2, %s1563_s8  ;;  %v1685_v5 = vld [vmem:[%s1670_s29 + $0x18] sm:$0xff]  ;;  %v1695_v7 = vld [vmem:[%s1670_s29 + $0x20] sm:$0xff]  ;;  %v320_v8 = vld [vmem:[%s1670_s29 + $0x2e] sm:$0xff]  ;;  %p1509_p0 = scmp.ne.s32.totalorder %s1507_s22, %s1508_s23 }
  0x20   : > { %v319_v6 = vld [vmem:[%s1670_s29 + $0x1e] sm:$0xff]  ;;  %v1703_v9 = vld [vmem:[%s1670_s29 + $0x30] sm:$0xff]  ;;  %v323_v14 = vld [vmem:[%s1670_s29 + $0x46] sm:$0xff] }
  0x21   : > { %v321_v10 = vld [vmem:[%s1670_s29 + $0x36] sm:$0xff]  ;;  %v322_v12 = vld [vmem:[%s1670_s29 + $0x3e] sm:$0xff]  ;;  %v1724_v15 = vld [vmem:[%s1670_s29 + $0x48] sm:$0xff]  ;;  %p1510_p1 = pnand %p1509_p0, %p1646_p5 }
  0x22   : > { %v1707_v11 = vld [vmem:[%s1670_s29 + $0x38] sm:$0xff]  ;;  %v1716_v13 = vld [vmem:[%s1670_s29 + $0x40] sm:$0xff]  ;;  %v1745_v21 = vld [vmem:[%s1670_s29 + $0x68] sm:$0xff] }
  0x23   : > { %v324_v16 = vld [vmem:[%s1670_s29 + $0x56] sm:$0xff]  ;;  %v325_v18 = vld [vmem:[%s1670_s29 + $0x5e] sm:$0xff]  ;;  %v326_v20 = vld [vmem:[%s1670_s29 + $0x66] sm:$0xff]  ;;  %p1511_p2 = pneg %p1510_p1 }
  0x24   : > { %v1728_v17 = vld [vmem:[%s1670_s29 + $0x58] sm:$0xff]  ;;  %v1737_v19 = vld [vmem:[%s1670_s29 + $0x60] sm:$0xff]  ;;  %v327_v22 = vld [vmem:[%s1670_s29 + $0x6e] sm:$0xff] }
  0x25   : > { %v1749_v23 = vld [vmem:[%s1670_s29 + $0x70] sm:$0xff]  ;;  %v328_v24 = vld [vmem:[%s1670_s29 + $0x7e] sm:$0xff]  ;;  %v1764_v26 = vld [vmem:[%s1670_s29 + $0x88] sm:$0xff] }
  0x26   : > { %428 = vrot.lane.b32.xlu0 %v1679_v3, %s1564_s9  ;;  %430 = vrot.lane.b32.xlu1 %v1682_v4, %s1564_s9  ;;  %v1758_v25 = vld [vmem:[%s1670_s29 + $0x80] sm:$0xff]  ;;  %v330_v27 = vld [vmem:[%s1670_s29 + $0x8e] sm:$0xff] }
  0x27   : > { %432 = vrot.lane.b32.xlu2 %v1685_v5, %s1564_s9  ;;  %v331_v28 = vld [vmem:[%s1670_s29 + $0x96] sm:$0xff]  ;;  %v329_v31 = vld [vmem:[%s1670_s29 + $0x86] sm:$0xff] }
  0x28   : > { %v1772_v29 = vld [vmem:[%s1670_s29 + $0x98] sm:$0xff]  ;;  %v1789_v34 = vld [vmem:[%s1670_s29 + $0x90] sm:$0xff]  ;;  %v300_v39 = vld [vmem:[%s1670_s29 + $0x4] sm:$0xff] }
  0x29   : > { %v301_v44 = vld [vmem:[%s1670_s29 + $0xc] sm:$0xff]  ;;  %v302_v50 = vld [vmem:[%s1670_s29 + $0x14] sm:$0xff]  ;;  %v303_v57 = vld [vmem:[%s1670_s29 + $0x1c] sm:$0xff] }
  0x2a   : > { %v304_v51 = vld [vmem:[%s1670_s29 + $0x2c] sm:$0xff]  ;;  %v305_v60 = vld [vmem:[%s1670_s29 + $0x34] sm:$0xff]  ;;  %v309_v30 = vld [vmem:[%s1670_s29 + $0x5c] sm:$0xff] }
  0x2e   : > { %370 = vrot.lane.b32.xlu0 %v319_v6, %s1563_s8  ;;  %434 = vrot.lane.b32.xlu1 %v1695_v7, %s1564_s9 }
  0x2f   : > { %372 = vrot.lane.b32.xlu2 %v320_v8, %s1563_s8  ;;  %v306_v8 = vld [vmem:[%s1670_s29 + $0x3c] sm:$0xff] }
  0x36   : > { %436 = vrot.lane.b32.xlu0 %v1703_v9, %s1564_s9  ;;  %374 = vrot.lane.b32.xlu1 %v321_v10, %s1563_s8 }
  0x37   : > { %438 = vrot.lane.b32.xlu2 %v1707_v11, %s1564_s9 }
  0x3e   : > { %376 = vrot.lane.b32.xlu0 %v322_v12, %s1563_s8  ;;  %440 = vrot.lane.b32.xlu1 %v1716_v13, %s1564_s9  ;;  %v308_v12 = vld [vmem:[%s1670_s29 + $0x54] sm:$0xff] }
  0x3f   : > { %378 = vrot.lane.b32.xlu2 %v323_v14, %s1563_s8 }
  0x46   : > { %442 = vrot.lane.b32.xlu0 %v1724_v15, %s1564_s9  ;;  %380 = vrot.lane.b32.xlu1 %v324_v16, %s1563_s8 }
  0x47   : > { %444 = vrot.lane.b32.xlu2 %v1728_v17, %s1564_s9 }
  0x4e   : > { %382 = vrot.lane.b32.xlu0 %v325_v18, %s1563_s8  ;;  %446 = vrot.lane.b32.xlu1 %v1737_v19, %s1564_s9 }
  0x4f   : > { %384 = vrot.lane.b32.xlu2 %v326_v20, %s1563_s8 }
  0x56   : > { %448 = vrot.lane.b32.xlu0 %v1745_v21, %s1564_s9  ;;  %386 = vrot.lane.b32.xlu1 %v327_v22, %s1563_s8  ;;  %v307_v22 = vld [vmem:[%s1670_s29 + $0x44] sm:$0xff] }
  0x57   : > { %450 = vrot.lane.b32.xlu2 %v1749_v23, %s1564_s9 }
  0x5e   : > { %388 = vrot.lane.b32.xlu0 %v328_v24, %s1563_s8  ;;  %452 = vrot.lane.b32.xlu1 %v1758_v25, %s1564_s9 }
  0x5f   : > { %390 = vrot.lane.b32.xlu2 %v329_v31, %s1563_s8 }
  0x66   : > { %454 = vrot.lane.b32.xlu0 %v1764_v26, %s1564_s9  ;;  %392 = vrot.lane.b32.xlu1 %v330_v27, %s1563_s8 }
  0x67   : > { %456 = vrot.lane.b32.xlu2 %v1789_v34, %s1564_s9 }
  0x6e   : > { %394 = vrot.lane.b32.xlu0 %v331_v28, %s1563_s8  ;;  %458 = vrot.lane.b32.xlu1 %v1772_v29, %s1564_s9  ;;  %s1512_s9 = scalar_lea.hbm %s2017_s7, 256 }
  0x6f   : > { %p1514_p4 = scmp.lt.s32.totalorder %s1512_s9, %s1508_s23 }
  0x71   : > { %p1515_p7 = por %p1514_p4, %p1513_p3 }
  0x73   : > { %p1516_p8 = pnand %p1515_p7, %p1511_p2 }
  0x79   : > { %v369_v35 = vpop.permute.xlu2 %368 }
  0x7a   : > { %v479_v53 = vsel %vm476_vm1, %v302_v50, %v369_v35  ;;  %v929_v50 = vld [vmem:[#allocation3 + $0x170] sm:$0xff] }
  0x81   : > { %v433_v38 = vpop.permute.xlu2 %432 }
  0x82   : > { %v496_v58 = vsel %vm493_vm2, %v479_v53, %v433_v38  ;;  %v310_v38 = vld [vmem:[%s1670_s29 + $0x64] sm:$0xff] }
  0x83   : > { %v765_v53 = vld [vmem:[#allocation3 + $0xe8] sm:$0xff] }
  0x89   : > { %v373_v45 = vpop.permute.xlu2 %372 }
  0x8a   : > { %v481_v54 = vsel %vm476_vm1, %v304_v51, %v373_v45  ;;  %v734_v45 = vld [vmem:[#allocation3 + $0x78] sm:$0xff] }
  0x8b   : > { %833 = vmatpush.msrb.mxu2 %v734_v45 }
  0x90   : > { %v365_v36 = vpop.permute.xlu0 %364  ;;  %v367_v37 = vpop.permute.xlu1 %366 }
  0x91   : > { %v477_v40 = vsel %vm476_vm1, %v300_v39, %v365_v36  ;;  %v478_v46 = vsel %vm476_vm1, %v301_v44, %v367_v37  ;;  %v439_v52 = vpop.permute.xlu2 %438 }
  0x98   : > { %v429_v41 = vpop.permute.xlu0 %428  ;;  %v431_v42 = vpop.permute.xlu1 %430 }
  0x99   : > { %v494_v43 = vsel %vm493_vm2, %v477_v40, %v429_v41  ;;  %v495_v49 = vsel %vm493_vm2, %v478_v46, %v431_v42  ;;  %v379_v63 = vpop.permute.xlu2 %378  ;;  %v767_v46 = vld [vmem:[#allocation3 + $0xf8] sm:$0xff] }
  0x9a   : > { %1351 = vmatmul.msk.f32.vlgmr.msra.gmra.mxu0 %vm517_vm3, %v494_v43  ;;  %v484_v28 = vsel %vm476_vm1, %v307_v22, %v379_v63  ;;  %v311_v43 = vld [vmem:[%s1670_s29 + $0x6c] sm:$0xff]  ;;  %768 = vmatpush.msrb.mxu1 %v767_v46  ;;  %v730_v63 = vld [vmem:[#allocation3 + $0x58] sm:$0xff] }
  0x9b   : > { %v761_v22 = vld [vmem:[#allocation3 + $0xc8] sm:$0xff]  ;;  %v921_v46 = vld [vmem:[#allocation3 + $0x130] sm:$0xff] }
  0xa0   : > { %v371_v47 = vpop.permute.xlu0 %370  ;;  %v435_v48 = vpop.permute.xlu1 %434 }
  0xa1   : > { %v480_v61 = vsel %vm476_vm1, %v303_v57, %v371_v47  ;;  %v445_v16 = vpop.permute.xlu2 %444  ;;  %v930_v47 = vld [vmem:[#allocation3 + $0x178] sm:$0xff]  ;;  %v764_v57 = vld [vmem:[#allocation3 + $0xe0] sm:$0xff] }
  0xa2   : > { %1352 = vmatmul.msk.f32.gmra.mxu0 %vm517_vm3, %v495_v49  ;;  %v497_v0 = vsel %vm493_vm2, %v480_v61, %v435_v48  ;;  %v733_v48 = vld [vmem:[#allocation3 + $0x70] sm:$0xff]  ;;  %931 = vmatpush.msrb.mxu3 %v930_v47  ;;  %v919_v47 = vld [vmem:[#allocation3 + $0x120] sm:$0xff] }
  0xa3   : > { %v766_v49 = vld [vmem:[#allocation3 + $0xf0] sm:$0xff]  ;;  %834 = vmatpush.msrb.mxu2 %v733_v48  ;;  %v918_v48 = vld [vmem:[#allocation3 + $0x118] sm:$0xff] }
  0xa4   : > { %769 = vmatpush.msrb.mxu1 %v766_v49  ;;  %932 = vmatpush.msrb.mxu3 %v929_v50  ;;  %v725_v49 = vld [vmem:[#allocation3 + $0x30] sm:$0xff] }
  0xa5   : > { %v758_v50 = vld [vmem:[#allocation3 + $0xb0] sm:$0xff] }
  0xa6   : > { %770 = vmatpush.msrb.mxu1 %v765_v53  ;;  %v916_v53 = vld [vmem:[#allocation3 + $0x108] sm:$0xff] }
  0xa8   : > { %v437_v55 = vpop.permute.xlu0 %436  ;;  %v375_v56 = vpop.permute.xlu1 %374  ;;  %771 = vmatpush.msrb.mxu1 %v764_v57  ;;  %v755_v57 = vld [vmem:[#allocation3 + $0x98] sm:$0xff] }
  0xa9   : > { %v498_v59 = vsel %vm493_vm2, %v481_v54, %v437_v55  ;;  %v482_v62 = vsel %vm476_vm1, %v305_v60, %v375_v56  ;;  %v385_v36 = vpop.permute.xlu2 %384  ;;  %v312_v54 = vld [vmem:[%s1670_s29 + $0x7c] sm:$0xff]  ;;  %v928_v55 = vld [vmem:[#allocation3 + $0x168] sm:$0xff] }
  0xaa   : > { %1353 = vmatmul.msk.f32.gmra.mxu0 %vm517_vm3, %v496_v58  ;;  %1355 = vmatmul.msk.f32.vlgmr.msra.gmra.mxu1 %vm517_vm3, %v498_v59  ;;  %v499_v1 = vsel %vm493_vm2, %v482_v62, %v439_v52  ;;  %v487_v39 = vsel %vm476_vm1, %v310_v38, %v385_v36  ;;  %v732_v52 = vld [vmem:[#allocation3 + $0x68] sm:$0xff]  ;;  %v731_v56 = vld [vmem:[#allocation3 + $0x60] sm:$0xff]  ;;  %v922_v38 = vld [vmem:[#allocation3 + $0x138] sm:$0xff] }
  0xab   : > { %835 = vmatpush.msrb.mxu2 %v732_v52  ;;  %933 = vmatpush.msrb.mxu3 %v928_v55  ;;  %v927_v62 = vld [vmem:[#allocation3 + $0x160] sm:$0xff]  ;;  %v314_v36 = vld [vmem:[%s1670_s29 + $0x8c] sm:$0xff] }
  0xac   : > { %v757_v52 = vld [vmem:[#allocation3 + $0xa8] sm:$0xff]  ;;  %v915_v55 = vld [vmem:[#allocation3 + $0x100] sm:$0xff] }
  0xad   : > { %836 = vmatpush.msrb.mxu2 %v731_v56  ;;  %934 = vmatpush.msrb.mxu3 %v927_v62  ;;  %v722_v56 = vld [vmem:[#allocation3 + $0x18] sm:$0xff]  ;;  %v719_v62 = vld [vmem:[#allocation3] sm:$0xff] }
  0xaf   : > { %837 = vmatpush.msrb.mxu2 %v730_v63  ;;  %v752_v63 = vld [vmem:[#allocation3 + $0x80] sm:$0xff] }
  0xb0   : > { %v377_v2 = vpop.permute.xlu0 %376  ;;  %v441_v6 = vpop.permute.xlu1 %440 }
  0xb1   : > { %v483_v10 = vsel %vm476_vm1, %v306_v8, %v377_v2  ;;  %v451_v44 = vpop.permute.xlu2 %450  ;;  %v1096_v2 = vld [vmem:[%s2015_s5] sm:$0x3f] }
  0xb2   : > { %1354 = vmatmul.msk.f32.gmra.mxu0 %vm517_vm3, %v497_v0  ;;  %1356 = vmatmul.msk.f32.gmra.mxu1 %vm517_vm3, %v499_v1  ;;  %v500_v14 = vsel %vm493_vm2, %v483_v10, %v441_v6  ;;  %v763_v1 = vld [vmem:[#allocation3 + $0xd8] sm:$0xff]  ;;  %v313_v8 = vld [vmem:[%s1670_s29 + $0x84] sm:$0xff] }
  0xb3   : > { %v926_v10 = vld [vmem:[#allocation3 + $0x158] sm:$0xff]  ;;  %772 = vmatpush.msrb.mxu1 %v763_v1  ;;  %1367 = vmatpush.msk.msrb.mxu0 %vm1149_vm4, %v1096_v2 }
  0xb4   : > { %935 = vmatpush.msrb.mxu3 %v926_v10 }
  0xb8   : > { %v443_v18 = vpop.permute.xlu0 %442  ;;  %v381_v20 = vpop.permute.xlu1 %380 }
  0xb9   : > { %v485_v24 = vsel %vm476_vm1, %v308_v12, %v381_v20  ;;  %v501_v31 = vsel %vm493_vm2, %v484_v28, %v443_v18  ;;  %v391_v6 = vpop.permute.xlu2 %390  ;;  %v729_v12 = vld [vmem:[#allocation3 + $0x50] sm:$0xff]  ;;  %v728_v18 = vld [vmem:[#allocation3 + $0x48] sm:$0xff] }
  0xba   : > { %1357 = vmatmul.msk.f32.gmra.mxu1 %vm517_vm3, %v500_v14  ;;  %v502_v27 = vsel %vm493_vm2, %v485_v24, %v445_v16  ;;  %v762_v14 = vld [vmem:[#allocation3 + $0xd0] sm:$0xff]  ;;  %v490_v20 = vsel %vm476_vm1, %v313_v8, %v391_v6  ;;  %838 = vmatpush.msrb.mxu2 %v729_v12  ;;  %v924_v24 = vld [vmem:[#allocation3 + $0x148] sm:$0xff] }
  0xbb   : > { %1359 = vmatmul.msk.f32.vlgmr.msra.gmra.mxu2 %vm517_vm3, %v502_v27  ;;  %v925_v16 = vld [vmem:[#allocation3 + $0x150] sm:$0xff]  ;;  %773 = vmatpush.msrb.mxu1 %v762_v14  ;;  %v727_v27 = vld [vmem:[#allocation3 + $0x40] sm:$0xff] }
  0xbc   : > { %1368 = vmatmul.msk.f32.vlgmr.msrb.gmra.mxu0 %vm476_vm1, %v1679_v3  ;;  %936 = vmatpush.msrb.mxu3 %v925_v16 }
  0xbd   : > { %839 = vmatpush.msrb.mxu2 %v728_v18  ;;  %774 = vmatpush.msrb.mxu1 %v761_v22 }
  0xbe   : > { %937 = vmatpush.msrb.mxu3 %v924_v24 }
  0xbf   : > { %840 = vmatpush.msrb.mxu2 %v727_v27 }
  0xc0   : > { %v383_v32 = vpop.permute.xlu0 %382  ;;  %v447_v33 = vpop.permute.xlu1 %446 }
  0xc1   : > { %v486_v35 = vsel %vm476_vm1, %v309_v30, %v383_v32  ;;  %v760_v30 = vld [vmem:[#allocation3 + $0xc0] sm:$0xff] }
  0xc2   : > { %1358 = vmatmul.msk.f32.gmra.mxu1 %vm517_vm3, %v501_v31  ;;  %v503_v37 = vsel %vm493_vm2, %v486_v35, %v447_v33  ;;  %v923_v32 = vld [vmem:[#allocation3 + $0x140] sm:$0xff]  ;;  %v726_v33 = vld [vmem:[#allocation3 + $0x38] sm:$0xff] }
  0xc3   : > { %1360 = vmatmul.msk.f32.gmra.mxu2 %vm517_vm3, %v503_v37  ;;  %v759_v37 = vld [vmem:[#allocation3 + $0xb8] sm:$0xff]  ;;  %775 = vmatpush.msrb.mxu1 %v760_v30 }
  0xc4   : > { %938 = vmatpush.msrb.mxu3 %v923_v32  ;;  %841 = vmatpush.msrb.mxu2 %v726_v33 }
  0xc5   : > { %776 = vmatpush.msrb.mxu1 %v759_v37  ;;  %1369 = vmatmul.msk.f32.gmra.mxu0 %vm476_vm1, %v1682_v4  ;;  %v920_v4 = vld [vmem:[#allocation3 + $0x128] sm:$0xff] }
  0xc6   : > { %939 = vmatpush.msrb.mxu3 %v922_v38  ;;  %842 = vmatpush.msrb.mxu2 %v725_v49 }
  0xc7   : > { %777 = vmatpush.msrb.mxu1 %v758_v50 }
  0xc8   : > { %v449_v40 = vpop.permute.xlu0 %448  ;;  %v387_v41 = vpop.permute.xlu1 %386  ;;  %940 = vmatpush.msrb.mxu3 %v921_v46 }
  0xc9   : > { %v504_v42 = vsel %vm493_vm2, %v487_v39, %v449_v40  ;;  %v488_v51 = vsel %vm476_vm1, %v311_v43, %v387_v41  ;;  %v457_v39 = vpop.permute.xlu2 %456  ;;  %778 = vmatpush.msrb.mxu1 %v757_v52 }
  0xca   : > { %v505_v58 = vsel %vm493_vm2, %v488_v51, %v451_v44  ;;  %941 = vmatpush.msrb.mxu3 %v920_v4  ;;  %v917_v51 = vld [vmem:[#allocation3 + $0x110] sm:$0xff] }
  0xcb   : > { %1361 = vmatmul.msk.f32.gmra.mxu2 %vm517_vm3, %v504_v42  ;;  %v315_v42 = vld [vmem:[%s1670_s29 + $0x94] sm:$0xff] }
  0xcc   : > { %942 = vmatpush.msrb.mxu3 %v919_v47 }
  0xcd   : > { %1370 = vmatmul.msk.f32.gmra.mxu0 %vm476_vm1, %v1685_v5  ;;  %v724_v5 = vld [vmem:[#allocation3 + $0x28] sm:$0xff] }
  0xce   : > { %943 = vmatpush.msrb.mxu3 %v918_v48  ;;  %843 = vmatpush.msrb.mxu2 %v724_v5 }
  0xd0   : > { %v389_v59 = vpop.permute.xlu0 %388  ;;  %v453_v60 = vpop.permute.xlu1 %452  ;;  %944 = vmatpush.msrb.mxu3 %v917_v51 }
  0xd1   : > { %v489_v61 = vsel %vm476_vm1, %v312_v54, %v389_v59  ;;  %v756_v54 = vld [vmem:[#allocation3 + $0xa0] sm:$0xff]  ;;  %v754_v59 = vld [vmem:[#allocation3 + $0x90] sm:$0xff] }
  0xd2   : > { %v506_v0 = vsel %vm493_vm2, %v489_v61, %v453_v60  ;;  %945 = vmatpush.msrb.mxu3 %v916_v53  ;;  %779 = vmatpush.msrb.mxu1 %v756_v54  ;;  %v720_v60 = vld [vmem:[#allocation3 + $0x8] sm:$0xff] }
  0xd3   : > { %1362 = vmatmul.msk.f32.gmra.mxu2 %vm517_vm3, %v505_v58  ;;  %1363 = vmatmul.msk.f32.vlgmr.msra.gmra.mxu3 %vm517_vm3, %v506_v0  ;;  %v1565_v58 = vmov 0.0   ;;  %v753_v61 = vld [vmem:[#allocation3 + $0x88] sm:$0xff] }
  0xd4   : > { %946 = vmatpush.msrb.mxu3 %v915_v55  ;;  %683 = vst [vmem:[#allocation2] sm:$0xff] %v1565_v58  ;;  %780 = vmatpush.msrb.mxu1 %v755_v57 }
  0xd5   : > { %1371 = vmatmul.msk.f32.gmra.mxu0 %vm476_vm1, %v1695_v7  ;;  %v723_v7 = vld [vmem:[#allocation3 + $0x20] sm:$0xff]  ;;  %684 = vst [vmem:[#allocation2 + $0x28] sm:$0xff] %v1565_v58 }
  0xd6   : > { %844 = vmatpush.msrb.mxu2 %v723_v7  ;;  %685 = vst [vmem:[#allocation2 + $0x50] sm:$0xff] %v1565_v58  ;;  %781 = vmatpush.msrb.mxu1 %v754_v59 }
  0xd7   : > { %686 = vst [vmem:[#allocation2 + $0x78] sm:$0xff] %v1565_v58 }
  0xd8   : > { %v455_v28 = vpop.permute.xlu0 %454  ;;  %v393_v35 = vpop.permute.xlu1 %392  ;;  %845 = vmatpush.msrb.mxu2 %v722_v56  ;;  %782 = vmatpush.msrb.mxu1 %v753_v61 }
  0xd9   : > { %v507_v31 = vsel %vm493_vm2, %v490_v20, %v455_v28  ;;  %v491_v3 = vsel %vm476_vm1, %v314_v36, %v393_v35 }
  0xda   : > { %v508_v40 = vsel %vm493_vm2, %v491_v3, %v457_v39  ;;  %783 = vmatpush.msrb.mxu1 %v752_v63 }
  0xdb   : > { %1364 = vmatmul.msk.f32.gmra.mxu3 %vm517_vm3, %v507_v31 }
  0xdd   : > { %1372 = vmatmul.msk.f32.gmra.mxu0 %vm476_vm1, %v1703_v9  ;;  %v721_v9 = vld [vmem:[#allocation3 + $0x10] sm:$0xff] }
  0xde   : > { %846 = vmatpush.msrb.mxu2 %v721_v9 }
  0xe0   : > { %v395_v41 = vpop.permute.xlu0 %394  ;;  %v459_v44 = vpop.permute.xlu1 %458  ;;  %847 = vmatpush.msrb.mxu2 %v720_v60 }
  0xe1   : > { %v492_v43 = vsel %vm476_vm1, %v315_v42, %v395_v41 }
  0xe2   : > { %v509_v45 = vsel %vm493_vm2, %v492_v43, %v459_v44  ;;  %848 = vmatpush.msrb.mxu2 %v719_v62 }
  0xe3   : > { %1365 = vmatmul.msk.f32.gmra.mxu3 %vm517_vm3, %v508_v40 }
  0xe5   : > { %1373 = vmatmul.msk.f32.gmra.mxu0 %vm476_vm1, %v1707_v11  ;;  %v1879_v11 = vld [vmem:[%s2012_s2] ss:$0 sm:$0xff] }
  0xeb   : > { %1366 = vmatmul.msk.f32.gmra.mxu3 %vm517_vm3, %v509_v45 }
  0xed   : > { %1374 = vmatmul.msk.f32.gmra.mxu0 %vm476_vm1, %v1716_v13 }
  0xf5   : > { %1375 = vmatmul.msk.f32.gmra.mxu0 %vm476_vm1, %v1724_v15 }
  0xfd   : > { %1376 = vmatmul.msk.f32.gmra.mxu0 %vm476_vm1, %v1728_v17 }
 0x105   : > { %1377 = vmatmul.msk.f32.gmra.mxu0 %vm476_vm1, %v1737_v19 }
 0x10d   : > { %1378 = vmatmul.msk.f32.gmra.mxu0 %vm476_vm1, %v1745_v21 }
 0x115   : > { %1379 = vmatmul.msk.f32.gmra.mxu0 %vm476_vm1, %v1749_v23 }
 0x117   : > { %v587_v0 = vpop.f32.mrf.mxu0 }
 0x118   : > { %v588_v1 = vadd.f32 %v1879_v11, %v587_v0 }
 0x11a   : > { %vm635_vm5 = vcmp.ge.f32.partialorder %v588_v1, 0.0  ;;  %v651_v2 = vmul.f32 0.01, %v588_v1 }
 0x11c   : > { %v667_v6 = vsel %vm635_vm5, %v588_v1, %v651_v2 }
 0x11d   : > { %687 = vst [vmem:[#allocation2 + $0x8] sm:$0xff] %v667_v6  ;;  %947 = vmatmul.f32.vlgmr.msrb.gmra.mxu3 %v667_v6  ;;  %1380 = vmatmul.msk.f32.gmra.mxu0 %vm476_vm1, %v1758_v25 }
 0x11f   : > { %v590_v13 = vpop.f32.mrf.mxu0 }
 0x120   : > { %v591_v15 = vadd.f32 %v1879_v11, %v590_v13 }
 0x122   : > { %vm636_vm6 = vcmp.ge.f32.partialorder %v591_v15, 0.0  ;;  %v652_v8 = vmul.f32 0.01, %v591_v15 }
 0x124   : > { %v668_v10 = vsel %vm636_vm6, %v591_v15, %v652_v8  ;;  %v735_v12 = vld [vmem:[#allocation2 + $0x6] sm:$0xff] }
 0x125   : > { %v703_v14 = vld [vmem:[#allocation2 + $0x4] sm:$0xff]  ;;  %688 = vst [vmem:[#allocation2 + $0x10] sm:$0xff] %v668_v10  ;;  %784 = vmatmul.f32.vlgmr.msrb.gmra.mxu1 %v735_v12  ;;  %950 = vmatmul.f32.gmra.mxu3 %v668_v10 }
 0x126   : > { %849 = vmatmul.f32.vlgmr.msrb.gmra.mxu2 %v703_v14  ;;  %1381 = vmatmul.msk.f32.gmra.mxu0 %vm476_vm1, %v1764_v26 }
 0x127   : > { %v593_v17 = vpop.f32.mrf.mxu0  ;;  %v599_v16 = vpop.f32.mrf.mxu1 }
 0x128   : > { %v594_v18 = vadd.f32 %v1879_v11, %v593_v17  ;;  %v600_v19 = vadd.f32 %v1879_v11, %v599_v16 }
 0x12a   : > { %vm637_vm7 = vcmp.ge.f32.partialorder %v594_v18, 0.0  ;;  %v653_v20 = vmul.f32 0.01, %v594_v18  ;;  %vm639_vm8 = vcmp.ge.f32.partialorder %v600_v19, 0.0  ;;  %v655_v22 = vmul.f32 0.01, %v600_v19 }
 0x12c   : > { %v669_v24 = vsel %vm637_vm7, %v594_v18, %v653_v20  ;;  %v671_v27 = vsel %vm639_vm8, %v600_v19, %v655_v22  ;;  %v736_v28 = vld [vmem:[#allocation2 + $0xe] sm:$0xff] }
 0x12d   : > { %v704_v30 = vld [vmem:[#allocation2 + $0xc] sm:$0xff]  ;;  %689 = vst [vmem:[#allocation2 + $0x18] sm:$0xff] %v669_v24  ;;  %787 = vmatmul.f32.gmra.mxu1 %v736_v28  ;;  %953 = vmatmul.f32.gmra.mxu3 %v669_v24 }
 0x12e   : > { %852 = vmatmul.f32.gmra.mxu2 %v704_v30  ;;  %691 = vst [vmem:[#allocation2 + $0x30] sm:$0xff] %v671_v27  ;;  %1382 = vmatmul.msk.f32.gmra.mxu0 %vm476_vm1, %v1789_v34 }
 0x12f   : > { %v596_v31 = vpop.f32.mrf.mxu0  ;;  %v602_v32 = vpop.f32.mrf.mxu1 }
 0x130   : > { %v597_v21 = vadd.f32 %v1879_v11, %v596_v31  ;;  %v603_v33 = vadd.f32 %v1879_v11, %v602_v32 }
 0x132   : > { %vm638_vm9 = vcmp.ge.f32.partialorder %v597_v21, 0.0  ;;  %v654_v35 = vmul.f32 0.01, %v597_v21  ;;  %vm640_vm10 = vcmp.ge.f32.partialorder %v603_v33, 0.0  ;;  %v656_v36 = vmul.f32 0.01, %v603_v33 }
 0x134   : > { %v670_v37 = vsel %vm638_vm9, %v597_v21, %v654_v35  ;;  %v672_v38 = vsel %vm640_vm10, %v603_v33, %v656_v36  ;;  %v737_v3 = vld [vmem:[#allocation2 + $0x16] sm:$0xff] }
 0x135   : > { %v705_v39 = vld [vmem:[#allocation2 + $0x14] sm:$0xff]  ;;  %690 = vst [vmem:[#allocation2 + $0x20] sm:$0xff] %v670_v37  ;;  %790 = vmatmul.f32.gmra.mxu1 %v737_v3  ;;  %956 = vmatmul.f32.gmra.mxu3 %v670_v37  ;;  %v707_v5 = vld [vmem:[#allocation2 + $0x2c] sm:$0xff] }
 0x136   : > { %855 = vmatmul.f32.gmra.mxu2 %v705_v39  ;;  %692 = vst [vmem:[#allocation2 + $0x38] sm:$0xff] %v672_v38  ;;  %v739_v51 = vld [vmem:[#allocation2 + $0x2e] sm:$0xff]  ;;  %1383 = vmatmul.msk.f32.gmra.mxu0 %vm476_vm1, %v1772_v29 }
 0x137   : > { %v605_v40 = vpop.f32.mrf.mxu1 }
 0x138   : > { %v606_v23 = vadd.f32 %v1879_v11, %v605_v40 }
 0x139   : > { %v1170_v3 = vpop.f32.mrf.mxu0 }
 0x13a   : > { %vm641_vm11 = vcmp.ge.f32.partialorder %v606_v23, 0.0  ;;  %v657_v41 = vmul.f32 0.01, %v606_v23 }
 0x13c   : > { %v673_v42 = vsel %vm641_vm11, %v606_v23, %v657_v41  ;;  %v738_v43 = vld [vmem:[#allocation2 + $0x1e] sm:$0xff] }
 0x13d   : > { %v706_v44 = vld [vmem:[#allocation2 + $0x1c] sm:$0xff]  ;;  %693 = vst [vmem:[#allocation2 + $0x40] sm:$0xff] %v673_v42  ;;  %793 = vmatmul.f32.gmra.mxu1 %v738_v43  ;;  %959 = vmatmul.f32.gmra.mxu3 %v671_v27  ;;  %v708_v55 = vld [vmem:[#allocation2 + $0x34] sm:$0xff] }
 0x13e   : > { %858 = vmatmul.f32.gmra.mxu2 %v706_v44  ;;  %v611_v45 = vpop.f32.mrf.mxu2  ;;  %v740_v54 = vld [vmem:[#allocation2 + $0x36] sm:$0xff] }
 0x13f   : > { %v608_v46 = vpop.f32.mrf.mxu1  ;;  %v612_v4 = vadd.f32 %v1879_v11, %v611_v45 }
 0x140   : > { %v609_v25 = vadd.f32 %v1879_v11, %v608_v46 }
 0x141   : > { %vm643_vm12 = vcmp.ge.f32.partialorder %v612_v4, 0.0  ;;  %v659_v47 = vmul.f32 0.01, %v612_v4 }
 0x142   : > { %vm642_vm13 = vcmp.ge.f32.partialorder %v609_v25, 0.0  ;;  %v658_v48 = vmul.f32 0.01, %v609_v25  ;;  %v1173_v23 = vpop.f32.mrf.mxu0 }
 0x143   : > { %v675_v49 = vsel %vm643_vm12, %v612_v4, %v659_v47 }
 0x144   : > { %v674_v50 = vsel %vm642_vm13, %v609_v25, %v658_v48  ;;  %695 = vst [vmem:[#allocation2 + $0x58] sm:$0xff] %v675_v49  ;;  %v741_v59 = vld [vmem:[#allocation2 + $0x3e] sm:$0xff] }
 0x145   : > { %694 = vst [vmem:[#allocation2 + $0x48] sm:$0xff] %v674_v50  ;;  %796 = vmatmul.f32.gmra.mxu1 %v739_v51  ;;  %962 = vmatmul.f32.gmra.mxu3 %v672_v38  ;;  %v709_v34 = vld [vmem:[#allocation2 + $0x3c] sm:$0xff] }
 0x146   : > { %861 = vmatmul.f32.gmra.mxu2 %v707_v5  ;;  %v614_v52 = vpop.f32.mrf.mxu2  ;;  %v1916_v25 = vld [vmem:[%s2014_s4] ss:$0 sm:$0xff] }
 0x147   : > { %v615_v53 = vadd.f32 %v1879_v11, %v614_v52 }
 0x149   : > { %vm644_vm14 = vcmp.ge.f32.partialorder %v615_v53, 0.0  ;;  %v660_v26 = vmul.f32 0.01, %v615_v53 }
 0x14a   : > { %v1176_v44 = vpop.f32.mrf.mxu0 }
 0x14b   : > { %v676_v7 = vsel %vm644_vm14, %v615_v53, %v660_v26  ;;  %v743_v14 = vld [vmem:[#allocation2 + $0x56] sm:$0xff] }
 0x14c   : > { %696 = vst [vmem:[#allocation2 + $0x60] sm:$0xff] %v676_v7  ;;  %v742_v6 = vld [vmem:[#allocation2 + $0x46] sm:$0xff]  ;;  %v711_v17 = vld [vmem:[#allocation2 + $0x54] sm:$0xff] }
 0x14d   : > { %799 = vmatmul.f32.gmra.mxu1 %v740_v54  ;;  %965 = vmatmul.f32.gmra.mxu3 %v673_v42  ;;  %v710_v13 = vld [vmem:[#allocation2 + $0x44] sm:$0xff] }
 0x14e   : > { %864 = vmatmul.f32.gmra.mxu2 %v708_v55  ;;  %v617_v56 = vpop.f32.mrf.mxu2 }
 0x14f   : > { %v618_v57 = vadd.f32 %v1879_v11, %v617_v56 }
 0x151   : > { %vm645_vm15 = vcmp.ge.f32.partialorder %v618_v57, 0.0  ;;  %v661_v58 = vmul.f32 0.01, %v618_v57 }
 0x152   : > { %v1179_v51 = vpop.f32.mrf.mxu0 }
 0x153   : > { %v677_v9 = vsel %vm645_vm15, %v618_v57, %v661_v58  ;;  %v744_v22 = vld [vmem:[#allocation2 + $0x5e] sm:$0xff] }
 0x154   : > { %697 = vst [vmem:[#allocation2 + $0x68] sm:$0xff] %v677_v9  ;;  %v712_v24 = vld [vmem:[#allocation2 + $0x5c] sm:$0xff] }
 0x155   : > { %802 = vmatmul.f32.gmra.mxu1 %v741_v59  ;;  %968 = vmatmul.f32.gmra.mxu3 %v674_v50 }
 0x156   : > { %867 = vmatmul.f32.gmra.mxu2 %v709_v34  ;;  %v620_v60 = vpop.f32.mrf.mxu2  ;;  %v623_v61 = vpop.f32.mrf.mxu3 }
 0x157   : > { %v621_v62 = vadd.f32 %v1879_v11, %v620_v60  ;;  %v624_v63 = vadd.f32 %v1879_v11, %v623_v61 }
 0x159   : > { %vm646_vm0 = vcmp.ge.f32.partialorder %v621_v62, 0.0  ;;  %v662_v0 = vmul.f32 0.01, %v621_v62  ;;  %vm647_vm2 = vcmp.ge.f32.partialorder %v624_v63, 0.0  ;;  %v663_v1 = vmul.f32 0.01, %v624_v63 }
 0x15a   : > { %v1182_v59 = vpop.f32.mrf.mxu0 }
 0x15b   : > { %v678_v29 = vsel %vm646_vm0, %v621_v62, %v662_v0  ;;  %v679_v2 = vsel %vm647_vm2, %v624_v63, %v663_v1  ;;  %v745_v32 = vld [vmem:[#allocation2 + $0x66] sm:$0xff] }
 0x15c   : > { %698 = vst [vmem:[#allocation2 + $0x70] sm:$0xff] %v678_v29  ;;  %v713_v21 = vld [vmem:[#allocation2 + $0x64] sm:$0xff] }
 0x15d   : > { %805 = vmatmul.f32.gmra.mxu1 %v742_v6  ;;  %699 = vst [vmem:[#allocation2 + $0x80] sm:$0xff] %v679_v2  ;;  %971 = vmatmul.f32.gmra.mxu3 %v675_v49  ;;  %v1921_v49 = vld [vmem:[%s2016_s6] ss:$0 sm:$0xff] }
 0x15e   : > { %870 = vmatmul.f32.gmra.mxu2 %v710_v13  ;;  %v626_v15 = vpop.f32.mrf.mxu3  ;;  %v1171_v52 = vadd.f32 %v1921_v49, %v1170_v3  ;;  %v1174_v34 = vadd.f32 %v1921_v49, %v1173_v23  ;;  %v1177_v13 = vadd.f32 %v1921_v49, %v1176_v44 }
 0x15f   : > { %v627_v8 = vadd.f32 %v1879_v11, %v626_v15 }
 0x161   : > { %vm648_vm1 = vcmp.ge.f32.partialorder %v627_v8, 0.0  ;;  %v664_v10 = vmul.f32 0.01, %v627_v8 }
 0x163   : > { %v680_v12 = vsel %vm648_vm1, %v627_v8, %v664_v10  ;;  %v746_v33 = vld [vmem:[#allocation2 + $0x6e] sm:$0xff]  ;;  %v1185_v8 = vpop.f32.mrf.mxu0 }
 0x164   : > { %700 = vst [vmem:[#allocation2 + $0x88] sm:$0xff] %v680_v12  ;;  %v714_v35 = vld [vmem:[#allocation2 + $0x6c] sm:$0xff]  ;;  %v747_v36 = vld [vmem:[#allocation2 + $0x7e] sm:$0xff] }
 0x165   : > { %808 = vmatmul.f32.gmra.mxu1 %v743_v14  ;;  %974 = vmatmul.f32.gmra.mxu3 %v676_v7  ;;  %v715_v37 = vld [vmem:[#allocation2 + $0x7c] sm:$0xff] }
 0x166   : > { %873 = vmatmul.f32.gmra.mxu2 %v711_v17  ;;  %v629_v16 = vpop.f32.mrf.mxu3 }
 0x167   : > { %v630_v18 = vadd.f32 %v1879_v11, %v629_v16 }
 0x169   : > { %vm649_vm3 = vcmp.ge.f32.partialorder %v630_v18, 0.0  ;;  %v665_v19 = vmul.f32 0.01, %v630_v18 }
 0x16b   : > { %v681_v20 = vsel %vm649_vm3, %v630_v18, %v665_v19  ;;  %v716_v38 = vld [vmem:[#allocation2 + $0x84] sm:$0xff] }
 0x16c   : > { %701 = vst [vmem:[#allocation2 + $0x90] sm:$0xff] %v681_v20 }
 0x16d   : > { %811 = vmatmul.f32.gmra.mxu1 %v744_v22  ;;  %977 = vmatmul.f32.gmra.mxu3 %v677_v9  ;;  %v1180_v22 = vadd.f32 %v1921_v49, %v1179_v51 }
 0x16e   : > { %876 = vmatmul.f32.gmra.mxu2 %v712_v24  ;;  %v632_v27 = vpop.f32.mrf.mxu3 }
 0x16f   : > { %v633_v28 = vadd.f32 %v1879_v11, %v632_v27  ;;  %v748_v11 = vld [vmem:[#allocation2 + $0x86] sm:$0xff] }
 0x171   : > { %vm650_vm4 = vcmp.ge.f32.partialorder %v633_v28, 0.0  ;;  %v666_v30 = vmul.f32 0.01, %v633_v28 }
 0x173   : > { %v682_v31 = vsel %vm650_vm4, %v633_v28, %v666_v30  ;;  %v749_v39 = vld [vmem:[#allocation2 + $0x8e] sm:$0xff] }
 0x174   : > { %702 = vst [vmem:[#allocation2 + $0x98] sm:$0xff] %v682_v31  ;;  %v717_v40 = vld [vmem:[#allocation2 + $0x8c] sm:$0xff] }
 0x175   : > { %814 = vmatmul.f32.gmra.mxu1 %v745_v32  ;;  %980 = vmatmul.f32.gmra.mxu3 %v678_v29  ;;  %v1188_v32 = vpop.f32.mrf.mxu0 }
 0x176   : > { %879 = vmatmul.f32.gmra.mxu2 %v713_v21 }
 0x17b   : > { %v750_v41 = vld [vmem:[#allocation2 + $0x96] sm:$0xff] }
 0x17c   : > { %v718_v42 = vld [vmem:[#allocation2 + $0x94] sm:$0xff] }
 0x17d   : > { %817 = vmatmul.f32.gmra.mxu1 %v746_v33  ;;  %983 = vmatmul.f32.gmra.mxu3 %v679_v2 }
 0x17e   : > { %882 = vmatmul.f32.gmra.mxu2 %v714_v35 }
 0x185   : > { %820 = vmatmul.f32.gmra.mxu1 %v747_v36  ;;  %986 = vmatmul.f32.gmra.mxu3 %v680_v12 }
 0x186   : > { %885 = vmatmul.f32.gmra.mxu2 %v715_v37  ;;  %v1183_v37 = vadd.f32 %v1921_v49, %v1182_v59 }
 0x18d   : > { %823 = vmatmul.f32.gmra.mxu1 %v748_v11  ;;  %989 = vmatmul.f32.gmra.mxu3 %v681_v20 }
 0x18e   : > { %888 = vmatmul.f32.gmra.mxu2 %v716_v38 }
 0x195   : > { %826 = vmatmul.f32.gmra.mxu1 %v749_v39  ;;  %992 = vmatmul.f32.gmra.mxu3 %v682_v31 }
 0x196   : > { %891 = vmatmul.f32.gmra.mxu2 %v717_v40 }
 0x19d   : > { %829 = vmatmul.f32.gmra.mxu1 %v750_v41 }
 0x19e   : > { %894 = vmatmul.f32.gmra.mxu2 %v718_v42 }
 0x1a0   : > { %v948_v43 = vpop.f32.mrf.mxu3 }
 0x1a2   : > { %v785_v45 = vpop.f32.mrf.mxu1 }
 0x1a8   : > { %v951_v47 = vpop.f32.mrf.mxu3 }
 0x1a9   : > { %v850_v46 = vpop.f32.mrf.mxu2 }
 0x1aa   : > { %v851_v4 = vadd.f32 %v850_v46, %v785_v45  ;;  %v788_v48 = vpop.f32.mrf.mxu1  ;;  %v1186_v45 = vadd.f32 %v1921_v49, %v1185_v8 }
 0x1ac   : > { %v996_v50 = vadd.f32 %v948_v43, %v851_v4  ;;  %v1191_v43 = vpop.f32.mrf.mxu0 }
 0x1ae   : > { %v1016_v5 = vadd.f32 %v1916_v25, %v996_v50 }
 0x1b0   : > { %v1048_v53 = vmul.f32 0.01, %v1016_v5  ;;  %vm1032_vm5 = vcmp.ge.f32.partialorder %v1016_v5, 0.0  ;;  %v954_v55 = vpop.f32.mrf.mxu3 }
 0x1b1   : > { %v853_v26 = vpop.f32.mrf.mxu2 }
 0x1b2   : > { %v1064_v7 = vsel %vm1032_vm5, %v1016_v5, %v1048_v53  ;;  %v854_v54 = vadd.f32 %v853_v26, %v788_v48  ;;  %v791_v57 = vpop.f32.mrf.mxu1 }
 0x1b3   : > { %v1218_v56 = vadd.f32 %v1171_v52, %v1064_v7  ;;  %v1189_v7 = vadd.f32 %v1921_v49, %v1188_v32 }
 0x1b4   : > { %v997_v58 = vadd.f32 %v951_v47, %v854_v54  ;;  %v1194_v26 = vpop.f32.mrf.mxu0 }
 0x1b5   : > { %1234 = vst [vmem:[%s1928_s15] sm:$0xff] %v1218_v56 }
 0x1b6   : > { %v1017_v9 = vadd.f32 %v1916_v25, %v997_v58 }
 0x1b8   : > { %v1049_v60 = vmul.f32 0.01, %v1017_v9  ;;  %vm1033_vm6 = vcmp.ge.f32.partialorder %v1017_v9, 0.0  ;;  %v957_v0 = vpop.f32.mrf.mxu3 }
 0x1b9   : > { %v856_v61 = vpop.f32.mrf.mxu2 }
 0x1ba   : > { %v1065_v62 = vsel %vm1033_vm6, %v1017_v9, %v1049_v60  ;;  %v857_v63 = vadd.f32 %v856_v61, %v791_v57  ;;  %v794_v29 = vpop.f32.mrf.mxu1  ;;  %v1192_v61 = vadd.f32 %v1921_v49, %v1191_v43 }
 0x1bb   : > { %v1219_v1 = vadd.f32 %v1174_v34, %v1065_v62 }
 0x1bc   : > { %v998_v2 = vadd.f32 %v954_v55, %v857_v63  ;;  %v1197_v63 = vpop.f32.mrf.mxu0 }
 0x1bd   : > { %1235 = vst [vmem:[%s1928_s15 + $0x8] sm:$0xff] %v1219_v1 }
 0x1be   : > { %v1018_v6 = vadd.f32 %v1916_v25, %v998_v2 }
 0x1c0   : > { %v1050_v15 = vmul.f32 0.01, %v1018_v6  ;;  %vm1034_vm7 = vcmp.ge.f32.partialorder %v1018_v6, 0.0  ;;  %v960_v17 = vpop.f32.mrf.mxu3 }
 0x1c1   : > { %v859_v10 = vpop.f32.mrf.mxu2 }
 0x1c2   : > { %v1066_v12 = vsel %vm1034_vm7, %v1018_v6, %v1050_v15  ;;  %v860_v14 = vadd.f32 %v859_v10, %v794_v29  ;;  %v797_v18 = vpop.f32.mrf.mxu1  ;;  %v1195_v10 = vadd.f32 %v1921_v49, %v1194_v26 }
 0x1c3   : > { %v1220_v16 = vadd.f32 %v1177_v13, %v1066_v12 }
 0x1c4   : > { %v999_v19 = vadd.f32 %v957_v0, %v860_v14 }
 0x1c5   : > { %1236 = vst [vmem:[%s1928_s15 + $0x10] sm:$0xff] %v1220_v16 }
 0x1c6   : > { %v1019_v20 = vadd.f32 %v1916_v25, %v999_v19  ;;  %v1200_v19 = vpop.f32.mrf.mxu0 }
 0x1c8   : > { %v1051_v24 = vmul.f32 0.01, %v1019_v20  ;;  %vm1035_vm8 = vcmp.ge.f32.partialorder %v1019_v20, 0.0  ;;  %v963_v31 = vpop.f32.mrf.mxu3 }
 0x1c9   : > { %v862_v27 = vpop.f32.mrf.mxu2 }
 0x1ca   : > { %v1067_v28 = vsel %vm1035_vm8, %v1019_v20, %v1051_v24  ;;  %v863_v30 = vadd.f32 %v862_v27, %v797_v18  ;;  %v800_v33 = vpop.f32.mrf.mxu1 }
 0x1cb   : > { %v1221_v21 = vadd.f32 %v1180_v22, %v1067_v28  ;;  %v1198_v28 = vadd.f32 %v1921_v49, %v1197_v63 }
 0x1cc   : > { %v1000_v35 = vadd.f32 %v960_v17, %v863_v30 }
 0x1cd   : > { %1237 = vst [vmem:[%s1928_s15 + $0x18] sm:$0xff] %v1221_v21 }
 0x1ce   : > { %v1020_v36 = vadd.f32 %v1916_v25, %v1000_v35 }
 0x1d0   : > { %v1052_v11 = vmul.f32 0.01, %v1020_v36  ;;  %vm1036_vm9 = vcmp.ge.f32.partialorder %v1020_v36, 0.0  ;;  %v966_v40 = vpop.f32.mrf.mxu3 }
 0x1d1   : > { %v865_v38 = vpop.f32.mrf.mxu2 }
 0x1d2   : > { %v1068_v3 = vsel %vm1036_vm9, %v1020_v36, %v1052_v11  ;;  %v866_v39 = vadd.f32 %v865_v38, %v800_v33  ;;  %v803_v41 = vpop.f32.mrf.mxu1  ;;  %v1203_v11 = vpop.f32.mrf.mxu0 }
 0x1d3   : > { %v1222_v23 = vadd.f32 %v1183_v37, %v1068_v3  ;;  %v1201_v3 = vadd.f32 %v1921_v49, %v1200_v19 }
 0x1d4   : > { %v1001_v42 = vadd.f32 %v963_v31, %v866_v39 }
 0x1d5   : > { %1238 = vst [vmem:[%s1928_s15 + $0x20] sm:$0xff] %v1222_v23 }
 0x1d6   : > { %v1021_v44 = vadd.f32 %v1916_v25, %v1001_v42 }
 0x1d8   : > { %v1053_v46 = vmul.f32 0.01, %v1021_v44  ;;  %vm1037_vm10 = vcmp.ge.f32.partialorder %v1021_v44, 0.0  ;;  %v969_v50 = vpop.f32.mrf.mxu3 }
 0x1d9   : > { %v868_v4 = vpop.f32.mrf.mxu2 }
 0x1da   : > { %v1069_v47 = vsel %vm1037_vm10, %v1021_v44, %v1053_v46  ;;  %v869_v48 = vadd.f32 %v868_v4, %v803_v41  ;;  %v806_v5 = vpop.f32.mrf.mxu1  ;;  %v1206_v4 = vpop.f32.mrf.mxu0 }
 0x1db   : > { %v1223_v51 = vadd.f32 %v1186_v45, %v1069_v47  ;;  %v1204_v47 = vadd.f32 %v1921_v49, %v1203_v11 }
 0x1dc   : > { %v1002_v52 = vadd.f32 %v966_v40, %v869_v48 }
 0x1dd   : > { %1239 = vst [vmem:[%s1928_s15 + $0x28] sm:$0xff] %v1223_v51 }
 0x1de   : > { %v1022_v53 = vadd.f32 %v1916_v25, %v1002_v52 }
 0x1e0   : > { %v1054_v54 = vmul.f32 0.01, %v1022_v53  ;;  %vm1038_vm11 = vcmp.ge.f32.partialorder %v1022_v53, 0.0  ;;  %v972_v58 = vpop.f32.mrf.mxu3 }
 0x1e1   : > { %v871_v55 = vpop.f32.mrf.mxu2 }
 0x1e2   : > { %v1070_v56 = vsel %vm1038_vm11, %v1022_v53, %v1054_v54  ;;  %v872_v57 = vadd.f32 %v871_v55, %v806_v5  ;;  %v809_v59 = vpop.f32.mrf.mxu1  ;;  %v1207_v54 = vadd.f32 %v1921_v49, %v1206_v4 }
 0x1e3   : > { %v1224_v9 = vadd.f32 %v1189_v7, %v1070_v56 }
 0x1e4   : > { %v1003_v34 = vadd.f32 %v969_v50, %v872_v57  ;;  %v1209_v57 = vpop.f32.mrf.mxu0 }
 0x1e5   : > { %1240 = vst [vmem:[%s1928_s15 + $0x30] sm:$0xff] %v1224_v9  ;;  %v1210_v63 = vadd.f32 %v1921_v49, %v1209_v57 }
 0x1e6   : > { %v1023_v60 = vadd.f32 %v1916_v25, %v1003_v34 }
 0x1e8   : > { %v1055_v62 = vmul.f32 0.01, %v1023_v60  ;;  %vm1039_vm12 = vcmp.ge.f32.partialorder %v1023_v60, 0.0  ;;  %v975_v2 = vpop.f32.mrf.mxu3 }
 0x1e9   : > { %v874_v0 = vpop.f32.mrf.mxu2 }
 0x1ea   : > { %v1071_v1 = vsel %vm1039_vm12, %v1023_v60, %v1055_v62  ;;  %v875_v29 = vadd.f32 %v874_v0, %v809_v59  ;;  %v812_v13 = vpop.f32.mrf.mxu1 }
 0x1eb   : > { %v1225_v6 = vadd.f32 %v1192_v61, %v1071_v1 }
 0x1ec   : > { %v1004_v15 = vadd.f32 %v972_v58, %v875_v29 }
 0x1ed   : > { %1241 = vst [vmem:[%s1928_s15 + $0x38] sm:$0xff] %v1225_v6 }
 0x1ee   : > { %v1024_v8 = vadd.f32 %v1916_v25, %v1004_v15 }
 0x1f0   : > { %v1056_v12 = vmul.f32 0.01, %v1024_v8  ;;  %vm1040_vm13 = vcmp.ge.f32.partialorder %v1024_v8, 0.0  ;;  %v978_v18 = vpop.f32.mrf.mxu3 }
 0x1f1   : > { %v877_v14 = vpop.f32.mrf.mxu2 }
 0x1f2   : > { %v1072_v17 = vsel %vm1040_vm13, %v1024_v8, %v1056_v12  ;;  %v878_v16 = vadd.f32 %v877_v14, %v812_v13  ;;  %v815_v22 = vpop.f32.mrf.mxu1  ;;  %v1212_v13 = vpop.f32.mrf.mxu0 }
 0x1f3   : > { %v1226_v20 = vadd.f32 %v1195_v10, %v1072_v17  ;;  %v1213_v12 = vadd.f32 %v1921_v49, %v1212_v13 }
 0x1f4   : > { %v1005_v24 = vadd.f32 %v975_v2, %v878_v16 }
 0x1f5   : > { %1242 = vst [vmem:[%s1928_s15 + $0x40] sm:$0xff] %v1226_v20 }
 0x1f6   : > { %v1025_v27 = vadd.f32 %v1916_v25, %v1005_v24 }
 0x1f8   : > { %v1057_v30 = vmul.f32 0.01, %v1025_v27  ;;  %vm1041_vm14 = vcmp.ge.f32.partialorder %v1025_v27, 0.0  ;;  %v981_v36 = vpop.f32.mrf.mxu3 }
 0x1f9   : > { %v880_v31 = vpop.f32.mrf.mxu2 }
 0x1fa   : > { %v1073_v32 = vsel %vm1041_vm14, %v1025_v27, %v1057_v30  ;;  %v881_v21 = vadd.f32 %v880_v31, %v815_v22  ;;  %v818_v35 = vpop.f32.mrf.mxu1  ;;  %v1215_v27 = vpop.f32.mrf.mxu0 }
 0x1fb   : > { %v1227_v33 = vadd.f32 %v1198_v28, %v1073_v32  ;;  %v1216_v30 = vadd.f32 %v1921_v49, %v1215_v27 }
 0x1fc   : > { %v1006_v37 = vadd.f32 %v978_v18, %v881_v21 }
 0x1fd   : > { %1243 = vst [vmem:[%s1928_s15 + $0x48] sm:$0xff] %v1227_v33 }
 0x1fe   : > { %v1026_v38 = vadd.f32 %v1916_v25, %v1006_v37 }
 0x200   : > { %v1058_v39 = vmul.f32 0.01, %v1026_v38  ;;  %vm1042_vm15 = vcmp.ge.f32.partialorder %v1026_v38, 0.0  ;;  %v984_v45 = vpop.f32.mrf.mxu3 }
 0x201   : > { %v883_v40 = vpop.f32.mrf.mxu2 }
 0x202   : > { %v1074_v23 = vsel %vm1042_vm15, %v1026_v38, %v1058_v39  ;;  %v884_v41 = vadd.f32 %v883_v40, %v818_v35  ;;  %v821_v43 = vpop.f32.mrf.mxu1 }
 0x203   : > { %v1228_v42 = vadd.f32 %v1201_v3, %v1074_v23 }
 0x204   : > { %v1007_v44 = vadd.f32 %v981_v36, %v884_v41 }
 0x205   : > { %1244 = vst [vmem:[%s1928_s15 + $0x50] sm:$0xff] %v1228_v42 }
 0x206   : > { %v1027_v46 = vadd.f32 %v1916_v25, %v1007_v44 }
 0x208   : > { %v1059_v48 = vmul.f32 0.01, %v1027_v46  ;;  %vm1043_vm0 = vcmp.ge.f32.partialorder %v1027_v46, 0.0  ;;  %v987_v55 = vpop.f32.mrf.mxu3 }
 0x209   : > { %v886_v50 = vpop.f32.mrf.mxu2 }
 0x20a   : > { %v1075_v51 = vsel %vm1043_vm0, %v1027_v46, %v1059_v48  ;;  %v887_v5 = vadd.f32 %v886_v50, %v821_v43  ;;  %v824_v26 = vpop.f32.mrf.mxu1 }
 0x20b   : > { %v1229_v52 = vadd.f32 %v1204_v47, %v1075_v51 }
 0x20c   : > { %v1008_v53 = vadd.f32 %v984_v45, %v887_v5 }
 0x20d   : > { %1245 = vst [vmem:[%s1928_s15 + $0x58] sm:$0xff] %v1229_v52 }
 0x20e   : > { %v1028_v7 = vadd.f32 %v1916_v25, %v1008_v53 }
 0x210   : > { %v1060_v56 = vmul.f32 0.01, %v1028_v7  ;;  %vm1044_vm2 = vcmp.ge.f32.partialorder %v1028_v7, 0.0  ;;  %v990_v29 = vpop.f32.mrf.mxu3 }
 0x211   : > { %v889_v58 = vpop.f32.mrf.mxu2 }
 0x212   : > { %v1076_v9 = vsel %vm1044_vm2, %v1028_v7, %v1060_v56  ;;  %v890_v59 = vadd.f32 %v889_v58, %v824_v26  ;;  %v827_v62 = vpop.f32.mrf.mxu1 }
 0x213   : > { %v1230_v34 = vadd.f32 %v1207_v54, %v1076_v9 }
 0x214   : > { %v1009_v60 = vadd.f32 %v987_v55, %v890_v59 }
 0x215   : > { %1246 = vst [vmem:[%s1928_s15 + $0x60] sm:$0xff] %v1230_v34 }
 0x216   : > { %v1029_v61 = vadd.f32 %v1916_v25, %v1009_v60 }
 0x218   : > { %v1061_v0 = vmul.f32 0.01, %v1029_v61  ;;  %vm1045_vm1 = vcmp.ge.f32.partialorder %v1029_v61, 0.0  ;;  %v993_v22 = vpop.f32.mrf.mxu3 }
 0x219   : > { %v892_v1 = vpop.f32.mrf.mxu2 }
 0x21a   : > { %v1077_v2 = vsel %vm1045_vm1, %v1029_v61, %v1061_v0  ;;  %v893_v6 = vadd.f32 %v892_v1, %v827_v62  ;;  %v830_v17 = vpop.f32.mrf.mxu1 }
 0x21b   : > { %v1231_v15 = vadd.f32 %v1210_v63, %v1077_v2 }
 0x21c   : > { %v1010_v8 = vadd.f32 %v990_v29, %v893_v6 }
 0x21d   : > { %1247 = vst [vmem:[%s1928_s15 + $0x68] sm:$0xff] %v1231_v15 }
 0x21e   : > { %v1030_v10 = vadd.f32 %v1916_v25, %v1010_v8 }
 0x220   : > { %v1062_v14 = vmul.f32 0.01, %v1030_v10  ;;  %vm1046_vm3 = vcmp.ge.f32.partialorder %v1030_v10, 0.0 }
 0x221   : > { %v895_v16 = vpop.f32.mrf.mxu2 }
 0x222   : > { %v1078_v18 = vsel %vm1046_vm3, %v1030_v10, %v1062_v14  ;;  %v896_v19 = vadd.f32 %v895_v16, %v830_v17 }
 0x223   : > { %v1232_v20 = vadd.f32 %v1213_v12, %v1078_v18 }
 0x224   : > { %v1011_v24 = vadd.f32 %v993_v22, %v896_v19 }
 0x225   : > { %1248 = vst [vmem:[%s1928_s15 + $0x70] sm:$0xff] %v1232_v20 }
 0x226   : > { %v1031_v28 = vadd.f32 %v1916_v25, %v1011_v24 }
 0x228   : > { %v1063_v31 = vmul.f32 0.01, %v1031_v28  ;;  %vm1047_vm4 = vcmp.ge.f32.partialorder %v1031_v28, 0.0 }
 0x22a   : > { %v1079_v32 = vsel %vm1047_vm4, %v1031_v28, %v1063_v31 }
 0x22b   : > { %v1233_v21 = vadd.f32 %v1216_v30, %v1079_v32 }
 0x22d   : > { %1249 = vst [vmem:[%s1928_s15 + $0x78] sm:$0xff] %v1233_v21 }
 0x22e   : > { %1519 = shalt.err (!%p1516_p8)
}
 0x22f   : > { %s1566_s13 = smov 128   ;;  %s1567_s15 = smov 8  }
 0x230   : > { %1406 = dma.vmem_to_hbm [thread:$0]  (%p1646_p5), %s1265_s20, 2048, %s1267_s28, %s1251_s21, %s1566_s13, %s1566_s13, %s1567_s15  }
 0x231 PF: > { %p1418_p9 = scmp.ge.s32.totalorder %s1558_s27, 2  ;;  %s1281_s17 = sand.u32 1, %s1546_s24  }
 0x232   : > { %s1282_s18 = scalar_lea.sflag [#allocation5], %s1281_s17 }
 0x233   : > { %p1413_p10 = pnand %p1418_p9, %p1650_p6 }
 0x235   : > { %p1414_p11 = pneg %p1413_p10 }
 0x237   : > { %1541 = dma.done.wait (%p1414_p11), %s1282_s18, 2048  }
 0x238   : > { %1543 = vsyncadd (%p1414_p11), %s1282_s18, 4294965248  ;;  %p18_p12 = scmp.ge.s32.totalorder %s1633_s30, 4   ;;  %s2020_s24 = smov %s1550_s25 }
 0x239   : > { %s2021_s25 = smov %s1554_s26  ;;  %s2022_s26 = smov %s1644_s10 }
 0x23a   : > { %s2023_s27 = smov %s1633_s30  ;;  %20 = sbr.rel (!%p18_p12) target bundleno = 4 (0x4), region = 90 }
 0x23f   :  { %1288 = vsyncpa [#allocation4], 1 }
 0x240   :  { %1290 = vsyncpa [#allocation4 + $0x1], 1 }
 0x241   :  { %1291 = vsyncpa [#allocation5], 1 }
 0x242   :  { %1293 = vsyncpa [#allocation5 + $0x1], 1 }

// kernel: tpu_custom_call.1
= control target key start
LH: loop header
LB: loop body
LE: loop exit
PB: predicated region body
PF: predicated region fallthrough
CT: control target
= control target key end

     0   :  { %12 = vsyncpa [#allocation4], 0  ;;  %s2010_s0 = inlined_call_operand.vmem [shape: f32[8,40,6], index: 0, kind: input, shape index: {}]   ;;  %s2011_s1 = inlined_call_operand.vmem [shape: f32[18,128], index: 1, kind: input, shape index: {}]   ;;  %s2012_s2 = inlined_call_operand.vmem [shape: f32[1,128], index: 2, kind: input, shape index: {}]   ;;  %s2013_s3 = inlined_call_operand.hbm [shape: f32[3,128,128], index: 3, kind: input, shape index: {}]   ;;  %s2014_s4 = inlined_call_operand.vmem [shape: f32[1,128], index: 4, kind: input, shape index: {}]   ;;  %s2015_s5 = inlined_call_operand.vmem [shape: f32[6,128], index: 5, kind: input, shape index: {}]   ;;  %s2016_s6 = inlined_call_operand.vmem [shape: f32[1,128], index: 6, kind: input, shape index: {}]   ;;  %s2017_s7 = inlined_call_operand.hbm [shape: f32[8,32,128], index: 7, kind: output, shape index: {}]  }
   0x1   :  { %13 = vsyncpa [#allocation5], 0 }
   0x2   :  { %15 = vsyncpa [#allocation5 + $0x1], 0  ;;  %s1608_s24 = smov 0   ;;  %s1610_s25 = smov 0  }
   0x3   :  { %s1612_s26 = smov 0   ;;  %s1614_s27 = smov 0  }
   0x4 LB: > { %s1629_s28 = sadd.s32 4294967295, %s1558_s27   ;;  %s1341_s29 = sadd.s32 4294967294, %s1558_s27   ;;  %s1558_s27 = sphi %s1614_s27, %s2023_s27   ;;  %s1554_s26 = sphi %s1612_s26, %s2022_s26   ;;  %s1550_s25 = sphi %s1610_s25, %s2021_s25   ;;  %s1546_s24 = sphi %s1608_s24, %s2020_s24  }
   0x5   : > { %s1633_s30 = sadd.s32 1, %s1558_s27   ;;  %s180_s8 = sadd.s32 1, %s1554_s26 }
   0x6   : > { %s177_s9 = ssub.s32 %s1558_s27, %s1633_s30  ;;  %p190_p0 = scmp.ne.s32.totalorder %s1554_s26, %s1550_s25 }
   0x7   : > { %p178_p1 = scmp.eq.s32.totalorder %s177_s9, 0  ;;  %p191_p2 = scmp.eq.s32.totalorder %s1629_s28, 1 }
   0x8   : > { %p196_p3 = scmp.ne.s32.totalorder %s1550_s25, %s1546_s24  ;;  %p197_p4 = scmp.eq.s32.totalorder %s1341_s29, 1 }
   0x9   : > { %s1644_s10 = scalar_select %p178_p1, %s1554_s26, %s180_s8  }
   0xa   : > { %p1646_p5 = por %p191_p2, %p190_p0  ;;  %p1650_p6 = por %p197_p4, %p196_p3 }
   0xb   : > { %p1342_p7 = scmp.ge.s32.totalorder %s1558_s27, 1  ;;  %p204_p8 = scmp.lt.s32.totalorder %s1558_s27, 3 }
   0xc   : > { %p1416_p9 = scmp.eq.s32.totalorder %s1629_s28, 0  ;;  %s221_s15 = sshll.u32 %s2013_s3, 4  ;;  %s222_s15 = int_to_ptr.hbm [resolvable:$true] %s221_s15 }
   0xd   : > { %p205_p10 = pnand %p1342_p7, %p204_p8  ;;  %s1560_s16 = smov [#allocation3]  }
   0xe   : > { %s223_s17 = sshll.u32 %s1560_s16, 4  ;;  %s1561_s18 = smov 128   ;;  %s224_s17 = int_to_ptr.vmem [resolvable:$true] %s223_s17 }
   0xf   : > { %p1408_p11 = pneg %p205_p10  ;;  %s1562_s19 = smov 8  }
  0x10   : > { %258 = sbr.rel (%p205_p10) target bundleno = 561 (0x231), region = 48 }
  0x11   : > { %p1409_p12 = pnand %p1416_p9, %p1408_p11 }
  0x13   : > { %1411 = dma.hbm_to_vmem [thread:$0]  (!%p1409_p12), %s222_s15, 6144, %s224_s17, [#allocation4], %s1561_s18, %s1561_s18, %s1562_s19  }
  0x15   : > { %1537 = dma.done.wait (%p1416_p9), [#allocation4], 6144  }
  0x16   : > { %1539 = vsyncadd (%p1416_p9), [#allocation4], 4294961152  ;;  %s1348_s20 = sshll.u32 %s1629_s28, 2  ;;  %s1563_s8 = smov 6   ;;  %v512_v30 = vld [vmem:[%s2011_s1 + $0x10] sm:$0x3] }
  0x17   : > { %p293_p13 = scmp.lt.s32.totalorder %s1348_s20, 7  ;;  %s1564_s9 = smov 12   ;;  %vm566_vm0 = vcmask 1041408   ;;  %v511_v32 = vld [vmem:[%s2011_s1 + $0x8] sm:$0xff]  ;;  %v510_v33 = vld [vmem:[%s2011_s1] sm:$0xff]  ;;  %vm476_vm1 = vcmask 48128  }
  0x18   : > { %1350 = vmatpush.msk.msra.mxu0 %vm566_vm0, %v512_v30  ;;  %1392 = vmatpush.msk.msra.mxu1 %vm566_vm0, %v512_v30  ;;  %vm493_vm2 = vcmask 97280   ;;  %vm517_vm3 = vcmask 146432   ;;  %vm1149_vm4 = vcmask 1045504   ;;  %s289_s13 = sand.u32 1, %s1550_s25   ;;  %s1391_s16 = sshll.u32 %s1629_s28, 7 }
  0x19   : > { %s2025_s20 = smov (!%p293_p13, %s1348_s20), 7  ;;  %1393 = vmatpush.msk.msra.mxu2 %vm566_vm0, %v512_v30  ;;  %1394 = vmatpush.msk.msra.mxu3 %vm566_vm0, %v512_v30  ;;  %s1347_s14 = sshll.u32 %s289_s13, 7 }
  0x1a   : > { %s1401_s21 = smul.u32 40, %s2025_s20  ;;  %584 = vmatpush.msra.mxu0 %v511_v32  ;;  %1395 = vmatpush.msra.mxu1 %v511_v32  ;;  %s1928_s15 = scalar_lea.vmem [#allocation6], %s1347_s14 }
  0x1b   : > { %1396 = vmatpush.msra.mxu2 %v511_v32  ;;  %1397 = vmatpush.msra.mxu3 %v511_v32  ;;  %s1263_s19 = scalar_lea.hbm %s2017_s7, %s1391_s16  ;;  %s1264_s20 = sshll.u32 %s1928_s15, 4  ;;  %s1265_s20 = int_to_ptr.vmem [resolvable:$true] %s1264_s20 }
  0x1c   : > { %s1670_s29 = scalar_lea.vmem %s2010_s0, %s1401_s21  ;;  %585 = vmatpush.msra.mxu0 %v510_v33  ;;  %1398 = vmatpush.msra.mxu1 %v510_v33  ;;  %s1266_s28 = sshll.u32 %s1263_s19, 4  ;;  %s1267_s28 = int_to_ptr.hbm [resolvable:$true] %s1266_s28 }
  0x1d   : > { %v316_v0 = vld [vmem:[%s1670_s29 + $0x6] sm:$0xff]  ;;  %v317_v1 = vld [vmem:[%s1670_s29 + $0xe] sm:$0xff]  ;;  %v318_v2 = vld [vmem:[%s1670_s29 + $0x16] sm:$0xff]  ;;  %1399 = vmatpush.msra.mxu2 %v510_v33  ;;  %1400 = vmatpush.msra.mxu3 %v510_v33  ;;  %s1251_s21 = scalar_lea.sflag [#allocation5], %s289_s13  ;;  %s1506_s22 = sshra.s32 %s1267_s28, 4  ;;  %s1507_s22 = int_to_ptr.hbm [resolvable:$true] %s1506_s22 }
  0x1e   : > { %364 = vrot.lane.b32.xlu0 %v316_v0, %s1563_s8  ;;  %366 = vrot.lane.b32.xlu1 %v317_v1, %s1563_s8  ;;  %v1679_v3 = vld [vmem:[%s1670_s29 + $0x8] sm:$0xff]  ;;  %v1682_v4 = vld [vmem:[%s1670_s29 + $0x10] sm:$0xff]  ;;  %s1508_s23 = scalar_lea.hbm %s1507_s22, 128  ;;  %p1513_p3 = scmp.lt.s32.totalorder %s1507_s22, %s2017_s7 }
  0x1f   : > { %368 = vrot.lane.b32.xlu2 %v318_v2, %s1563_s8  ;;  %v1685_v5 = vld [vmem:[%s1670_s29 + $0x18] sm:$0xff]  ;;  %v1695_v7 = vld [vmem:[%s1670_s29 + $0x20] sm:$0xff]  ;;  %v320_v8 = vld [vmem:[%s1670_s29 + $0x2e] sm:$0xff]  ;;  %p1509_p0 = scmp.ne.s32.totalorder %s1507_s22, %s1508_s23 }
  0x20   : > { %v319_v6 = vld [vmem:[%s1670_s29 + $0x1e] sm:$0xff]  ;;  %v1703_v9 = vld [vmem:[%s1670_s29 + $0x30] sm:$0xff]  ;;  %v323_v14 = vld [vmem:[%s1670_s29 + $0x46] sm:$0xff] }
  0x21   : > { %v321_v10 = vld [vmem:[%s1670_s29 + $0x36] sm:$0xff]  ;;  %v322_v12 = vld [vmem:[%s1670_s29 + $0x3e] sm:$0xff]  ;;  %v1724_v15 = vld [vmem:[%s1670_s29 + $0x48] sm:$0xff]  ;;  %p1510_p1 = pnand %p1509_p0, %p1646_p5 }
  0x22   : > { %v1707_v11 = vld [vmem:[%s1670_s29 + $0x38] sm:$0xff]  ;;  %v1716_v13 = vld [vmem:[%s1670_s29 + $0x40] sm:$0xff]  ;;  %v1745_v21 = vld [vmem:[%s1670_s29 + $0x68] sm:$0xff] }
  0x23   : > { %v324_v16 = vld [vmem:[%s1670_s29 + $0x56] sm:$0xff]  ;;  %v325_v18 = vld [vmem:[%s1670_s29 + $0x5e] sm:$0xff]  ;;  %v326_v20 = vld [vmem:[%s1670_s29 + $0x66] sm:$0xff]  ;;  %p1511_p2 = pneg %p1510_p1 }
  0x24   : > { %v1728_v17 = vld [vmem:[%s1670_s29 + $0x58] sm:$0xff]  ;;  %v1737_v19 = vld [vmem:[%s1670_s29 + $0x60] sm:$0xff]  ;;  %v327_v22 = vld [vmem:[%s1670_s29 + $0x6e] sm:$0xff] }
  0x25   : > { %v1749_v23 = vld [vmem:[%s1670_s29 + $0x70] sm:$0xff]  ;;  %v328_v24 = vld [vmem:[%s1670_s29 + $0x7e] sm:$0xff]  ;;  %v1764_v26 = vld [vmem:[%s1670_s29 + $0x88] sm:$0xff] }
  0x26   : > { %428 = vrot.lane.b32.xlu0 %v1679_v3, %s1564_s9  ;;  %430 = vrot.lane.b32.xlu1 %v1682_v4, %s1564_s9  ;;  %v1758_v25 = vld [vmem:[%s1670_s29 + $0x80] sm:$0xff]  ;;  %v330_v27 = vld [vmem:[%s1670_s29 + $0x8e] sm:$0xff] }
  0x27   : > { %432 = vrot.lane.b32.xlu2 %v1685_v5, %s1564_s9  ;;  %v331_v28 = vld [vmem:[%s1670_s29 + $0x96] sm:$0xff]  ;;  %v329_v31 = vld [vmem:[%s1670_s29 + $0x86] sm:$0xff] }
  0x28   : > { %v1772_v29 = vld [vmem:[%s1670_s29 + $0x98] sm:$0xff]  ;;  %v1789_v34 = vld [vmem:[%s1670_s29 + $0x90] sm:$0xff]  ;;  %v300_v39 = vld [vmem:[%s1670_s29 + $0x4] sm:$0xff] }
  0x29   : > { %v301_v44 = vld [vmem:[%s1670_s29 + $0xc] sm:$0xff]  ;;  %v302_v50 = vld [vmem:[%s1670_s29 + $0x14] sm:$0xff]  ;;  %v303_v57 = vld [vmem:[%s1670_s29 + $0x1c] sm:$0xff] }
  0x2a   : > { %v304_v51 = vld [vmem:[%s1670_s29 + $0x2c] sm:$0xff]  ;;  %v305_v60 = vld [vmem:[%s1670_s29 + $0x34] sm:$0xff]  ;;  %v309_v30 = vld [vmem:[%s1670_s29 + $0x5c] sm:$0xff] }
  0x2e   : > { %370 = vrot.lane.b32.xlu0 %v319_v6, %s1563_s8  ;;  %434 = vrot.lane.b32.xlu1 %v1695_v7, %s1564_s9 }
  0x2f   : > { %372 = vrot.lane.b32.xlu2 %v320_v8, %s1563_s8  ;;  %v306_v8 = vld [vmem:[%s1670_s29 + $0x3c] sm:$0xff] }
  0x36   : > { %436 = vrot.lane.b32.xlu0 %v1703_v9, %s1564_s9  ;;  %374 = vrot.lane.b32.xlu1 %v321_v10, %s1563_s8 }
  0x37   : > { %438 = vrot.lane.b32.xlu2 %v1707_v11, %s1564_s9 }
  0x3e   : > { %376 = vrot.lane.b32.xlu0 %v322_v12, %s1563_s8  ;;  %440 = vrot.lane.b32.xlu1 %v1716_v13, %s1564_s9  ;;  %v308_v12 = vld [vmem:[%s1670_s29 + $0x54] sm:$0xff] }
  0x3f   : > { %378 = vrot.lane.b32.xlu2 %v323_v14, %s1563_s8 }
  0x46   : > { %442 = vrot.lane.b32.xlu0 %v1724_v15, %s1564_s9  ;;  %380 = vrot.lane.b32.xlu1 %v324_v16, %s1563_s8 }
  0x47   : > { %444 = vrot.lane.b32.xlu2 %v1728_v17, %s1564_s9 }
  0x4e   : > { %382 = vrot.lane.b32.xlu0 %v325_v18, %s1563_s8  ;;  %446 = vrot.lane.b32.xlu1 %v1737_v19, %s1564_s9 }
  0x4f   : > { %384 = vrot.lane.b32.xlu2 %v326_v20, %s1563_s8 }
  0x56   : > { %448 = vrot.lane.b32.xlu0 %v1745_v21, %s1564_s9  ;;  %386 = vrot.lane.b32.xlu1 %v327_v22, %s1563_s8  ;;  %v307_v22 = vld [vmem:[%s1670_s29 + $0x44] sm:$0xff] }
  0x57   : > { %450 = vrot.lane.b32.xlu2 %v1749_v23, %s1564_s9 }
  0x5e   : > { %388 = vrot.lane.b32.xlu0 %v328_v24, %s1563_s8  ;;  %452 = vrot.lane.b32.xlu1 %v1758_v25, %s1564_s9 }
  0x5f   : > { %390 = vrot.lane.b32.xlu2 %v329_v31, %s1563_s8 }
  0x66   : > { %454 = vrot.lane.b32.xlu0 %v1764_v26, %s1564_s9  ;;  %392 = vrot.lane.b32.xlu1 %v330_v27, %s1563_s8 }
  0x67   : > { %456 = vrot.lane.b32.xlu2 %v1789_v34, %s1564_s9 }
  0x6e   : > { %394 = vrot.lane.b32.xlu0 %v331_v28, %s1563_s8  ;;  %458 = vrot.lane.b32.xlu1 %v1772_v29, %s1564_s9  ;;  %s1512_s9 = scalar_lea.hbm %s2017_s7, 256 }
  0x6f   : > { %p1514_p4 = scmp.lt.s32.totalorder %s1512_s9, %s1508_s23 }
  0x71   : > { %p1515_p7 = por %p1514_p4, %p1513_p3 }
  0x73   : > { %p1516_p8 = pnand %p1515_p7, %p1511_p2 }
  0x79   : > { %v369_v35 = vpop.permute.xlu2 %368 }
  0x7a   : > { %v479_v53 = vsel %vm476_vm1, %v302_v50, %v369_v35  ;;  %v929_v50 = vld [vmem:[#allocation3 + $0x170] sm:$0xff] }
  0x81   : > { %v433_v38 = vpop.permute.xlu2 %432 }
  0x82   : > { %v496_v58 = vsel %vm493_vm2, %v479_v53, %v433_v38  ;;  %v310_v38 = vld [vmem:[%s1670_s29 + $0x64] sm:$0xff] }
  0x83   : > { %v765_v53 = vld [vmem:[#allocation3 + $0xe8] sm:$0xff] }
  0x89   : > { %v373_v45 = vpop.permute.xlu2 %372 }
  0x8a   : > { %v481_v54 = vsel %vm476_vm1, %v304_v51, %v373_v45  ;;  %v734_v45 = vld [vmem:[#allocation3 + $0x78] sm:$0xff] }
  0x8b   : > { %833 = vmatpush.msrb.mxu2 %v734_v45 }
  0x90   : > { %v365_v36 = vpop.permute.xlu0 %364  ;;  %v367_v37 = vpop.permute.xlu1 %366 }
  0x91   : > { %v477_v40 = vsel %vm476_vm1, %v300_v39, %v365_v36  ;;  %v478_v46 = vsel %vm476_vm1, %v301_v44, %v367_v37  ;;  %v439_v52 = vpop.permute.xlu2 %438 }
  0x98   : > { %v429_v41 = vpop.permute.xlu0 %428  ;;  %v431_v42 = vpop.permute.xlu1 %430 }
  0x99   : > { %v494_v43 = vsel %vm493_vm2, %v477_v40, %v429_v41  ;;  %v495_v49 = vsel %vm493_vm2, %v478_v46, %v431_v42  ;;  %v379_v63 = vpop.permute.xlu2 %378  ;;  %v767_v46 = vld [vmem:[#allocation3 + $0xf8] sm:$0xff] }
  0x9a   : > { %1351 = vmatmul.msk.f32.vlgmr.msra.gmra.mxu0 %vm517_vm3, %v494_v43  ;;  %v484_v28 = vsel %vm476_vm1, %v307_v22, %v379_v63  ;;  %v311_v43 = vld [vmem:[%s1670_s29 + $0x6c] sm:$0xff]  ;;  %768 = vmatpush.msrb.mxu1 %v767_v46  ;;  %v730_v63 = vld [vmem:[#allocation3 + $0x58] sm:$0xff] }
  0x9b   : > { %v761_v22 = vld [vmem:[#allocation3 + $0xc8] sm:$0xff]  ;;  %v921_v46 = vld [vmem:[#allocation3 + $0x130] sm:$0xff] }
  0xa0   : > { %v371_v47 = vpop.permute.xlu0 %370  ;;  %v435_v48 = vpop.permute.xlu1 %434 }
  0xa1   : > { %v480_v61 = vsel %vm476_vm1, %v303_v57, %v371_v47  ;;  %v445_v16 = vpop.permute.xlu2 %444  ;;  %v930_v47 = vld [vmem:[#allocation3 + $0x178] sm:$0xff]  ;;  %v764_v57 = vld [vmem:[#allocation3 + $0xe0] sm:$0xff] }
  0xa2   : > { %1352 = vmatmul.msk.f32.gmra.mxu0 %vm517_vm3, %v495_v49  ;;  %v497_v0 = vsel %vm493_vm2, %v480_v61, %v435_v48  ;;  %v733_v48 = vld [vmem:[#allocation3 + $0x70] sm:$0xff]  ;;  %931 = vmatpush.msrb.mxu3 %v930_v47  ;;  %v919_v47 = vld [vmem:[#allocation3 + $0x120] sm:$0xff] }
  0xa3   : > { %v766_v49 = vld [vmem:[#allocation3 + $0xf0] sm:$0xff]  ;;  %834 = vmatpush.msrb.mxu2 %v733_v48  ;;  %v918_v48 = vld [vmem:[#allocation3 + $0x118] sm:$0xff] }
  0xa4   : > { %769 = vmatpush.msrb.mxu1 %v766_v49  ;;  %932 = vmatpush.msrb.mxu3 %v929_v50  ;;  %v725_v49 = vld [vmem:[#allocation3 + $0x30] sm:$0xff] }
  0xa5   : > { %v758_v50 = vld [vmem:[#allocation3 + $0xb0] sm:$0xff] }
  0xa6   : > { %770 = vmatpush.msrb.mxu1 %v765_v53  ;;  %v916_v53 = vld [vmem:[#allocation3 + $0x108] sm:$0xff] }
  0xa8   : > { %v437_v55 = vpop.permute.xlu0 %436  ;;  %v375_v56 = vpop.permute.xlu1 %374  ;;  %771 = vmatpush.msrb.mxu1 %v764_v57  ;;  %v755_v57 = vld [vmem:[#allocation3 + $0x98] sm:$0xff] }
  0xa9   : > { %v498_v59 = vsel %vm493_vm2, %v481_v54, %v437_v55  ;;  %v482_v62 = vsel %vm476_vm1, %v305_v60, %v375_v56  ;;  %v385_v36 = vpop.permute.xlu2 %384  ;;  %v312_v54 = vld [vmem:[%s1670_s29 + $0x7c] sm:$0xff]  ;;  %v928_v55 = vld [vmem:[#allocation3 + $0x168] sm:$0xff] }
  0xaa   : > { %1353 = vmatmul.msk.f32.gmra.mxu0 %vm517_vm3, %v496_v58  ;;  %1355 = vmatmul.msk.f32.vlgmr.msra.gmra.mxu1 %vm517_vm3, %v498_v59  ;;  %v499_v1 = vsel %vm493_vm2, %v482_v62, %v439_v52  ;;  %v487_v39 = vsel %vm476_vm1, %v310_v38, %v385_v36  ;;  %v732_v52 = vld [vmem:[#allocation3 + $0x68] sm:$0xff]  ;;  %v731_v56 = vld [vmem:[#allocation3 + $0x60] sm:$0xff]  ;;  %v922_v38 = vld [vmem:[#allocation3 + $0x138] sm:$0xff] }
  0xab   : > { %835 = vmatpush.msrb.mxu2 %v732_v52  ;;  %933 = vmatpush.msrb.mxu3 %v928_v55  ;;  %v927_v62 = vld [vmem:[#allocation3 + $0x160] sm:$0xff]  ;;  %v314_v36 = vld [vmem:[%s1670_s29 + $0x8c] sm:$0xff] }
  0xac   : > { %v757_v52 = vld [vmem:[#allocation3 + $0xa8] sm:$0xff]  ;;  %v915_v55 = vld [vmem:[#allocation3 + $0x100] sm:$0xff] }
  0xad   : > { %836 = vmatpush.msrb.mxu2 %v731_v56  ;;  %934 = vmatpush.msrb.mxu3 %v927_v62  ;;  %v722_v56 = vld [vmem:[#allocation3 + $0x18] sm:$0xff]  ;;  %v719_v62 = vld [vmem:[#allocation3] sm:$0xff] }
  0xaf   : > { %837 = vmatpush.msrb.mxu2 %v730_v63  ;;  %v752_v63 = vld [vmem:[#allocation3 + $0x80] sm:$0xff] }
  0xb0   : > { %v377_v2 = vpop.permute.xlu0 %376  ;;  %v441_v6 = vpop.permute.xlu1 %440 }
  0xb1   : > { %v483_v10 = vsel %vm476_vm1, %v306_v8, %v377_v2  ;;  %v451_v44 = vpop.permute.xlu2 %450  ;;  %v1096_v2 = vld [vmem:[%s2015_s5] sm:$0x3f] }
  0xb2   : > { %1354 = vmatmul.msk.f32.gmra.mxu0 %vm517_vm3, %v497_v0  ;;  %1356 = vmatmul.msk.f32.gmra.mxu1 %vm517_vm3, %v499_v1  ;;  %v500_v14 = vsel %vm493_vm2, %v483_v10, %v441_v6  ;;  %v763_v1 = vld [vmem:[#allocation3 + $0xd8] sm:$0xff]  ;;  %v313_v8 = vld [vmem:[%s1670_s29 + $0x84] sm:$0xff] }
  0xb3   : > { %v926_v10 = vld [vmem:[#allocation3 + $0x158] sm:$0xff]  ;;  %772 = vmatpush.msrb.mxu1 %v763_v1  ;;  %1367 = vmatpush.msk.msrb.mxu0 %vm1149_vm4, %v1096_v2 }
  0xb4   : > { %935 = vmatpush.msrb.mxu3 %v926_v10 }
  0xb8   : > { %v443_v18 = vpop.permute.xlu0 %442  ;;  %v381_v20 = vpop.permute.xlu1 %380 }
  0xb9   : > { %v485_v24 = vsel %vm476_vm1, %v308_v12, %v381_v20  ;;  %v501_v31 = vsel %vm493_vm2, %v484_v28, %v443_v18  ;;  %v391_v6 = vpop.permute.xlu2 %390  ;;  %v729_v12 = vld [vmem:[#allocation3 + $0x50] sm:$0xff]  ;;  %v728_v18 = vld [vmem:[#allocation3 + $0x48] sm:$0xff] }
  0xba   : > { %1357 = vmatmul.msk.f32.gmra.mxu1 %vm517_vm3, %v500_v14  ;;  %v502_v27 = vsel %vm493_vm2, %v485_v24, %v445_v16  ;;  %v762_v14 = vld [vmem:[#allocation3 + $0xd0] sm:$0xff]  ;;  %v490_v20 = vsel %vm476_vm1, %v313_v8, %v391_v6  ;;  %838 = vmatpush.msrb.mxu2 %v729_v12  ;;  %v924_v24 = vld [vmem:[#allocation3 + $0x148] sm:$0xff] }
  0xbb   : > { %1359 = vmatmul.msk.f32.vlgmr.msra.gmra.mxu2 %vm517_vm3, %v502_v27  ;;  %v925_v16 = vld [vmem:[#allocation3 + $0x150] sm:$0xff]  ;;  %773 = vmatpush.msrb.mxu1 %v762_v14  ;;  %v727_v27 = vld [vmem:[#allocation3 + $0x40] sm:$0xff] }
  0xbc   : > { %1368 = vmatmul.msk.f32.vlgmr.msrb.gmra.mxu0 %vm476_vm1, %v1679_v3  ;;  %936 = vmatpush.msrb.mxu3 %v925_v16 }
  0xbd   : > { %839 = vmatpush.msrb.mxu2 %v728_v18  ;;  %774 = vmatpush.msrb.mxu1 %v761_v22 }
  0xbe   : > { %937 = vmatpush.msrb.mxu3 %v924_v24 }
  0xbf   : > { %840 = vmatpush.msrb.mxu2 %v727_v27 }
  0xc0   : > { %v383_v32 = vpop.permute.xlu0 %382  ;;  %v447_v33 = vpop.permute.xlu1 %446 }
  0xc1   : > { %v486_v35 = vsel %vm476_vm1, %v309_v30, %v383_v32  ;;  %v760_v30 = vld [vmem:[#allocation3 + $0xc0] sm:$0xff] }
  0xc2   : > { %1358 = vmatmul.msk.f32.gmra.mxu1 %vm517_vm3, %v501_v31  ;;  %v503_v37 = vsel %vm493_vm2, %v486_v35, %v447_v33  ;;  %v923_v32 = vld [vmem:[#allocation3 + $0x140] sm:$0xff]  ;;  %v726_v33 = vld [vmem:[#allocation3 + $0x38] sm:$0xff] }
  0xc3   : > { %1360 = vmatmul.msk.f32.gmra.mxu2 %vm517_vm3, %v503_v37  ;;  %v759_v37 = vld [vmem:[#allocation3 + $0xb8] sm:$0xff]  ;;  %775 = vmatpush.msrb.mxu1 %v760_v30 }
  0xc4   : > { %938 = vmatpush.msrb.mxu3 %v923_v32  ;;  %841 = vmatpush.msrb.mxu2 %v726_v33 }
  0xc5   : > { %776 = vmatpush.msrb.mxu1 %v759_v37  ;;  %1369 = vmatmul.msk.f32.gmra.mxu0 %vm476_vm1, %v1682_v4  ;;  %v920_v4 = vld [vmem:[#allocation3 + $0x128] sm:$0xff] }
  0xc6   : > { %939 = vmatpush.msrb.mxu3 %v922_v38  ;;  %842 = vmatpush.msrb.mxu2 %v725_v49 }
  0xc7   : > { %777 = vmatpush.msrb.mxu1 %v758_v50 }
  0xc8   : > { %v449_v40 = vpop.permute.xlu0 %448  ;;  %v387_v41 = vpop.permute.xlu1 %386  ;;  %940 = vmatpush.msrb.mxu3 %v921_v46 }
  0xc9   : > { %v504_v42 = vsel %vm493_vm2, %v487_v39, %v449_v40  ;;  %v488_v51 = vsel %vm476_vm1, %v311_v43, %v387_v41  ;;  %v457_v39 = vpop.permute.xlu2 %456  ;;  %778 = vmatpush.msrb.mxu1 %v757_v52 }
  0xca   : > { %v505_v58 = vsel %vm493_vm2, %v488_v51, %v451_v44  ;;  %941 = vmatpush.msrb.mxu3 %v920_v4  ;;  %v917_v51 = vld [vmem:[#allocation3 + $0x110] sm:$0xff] }
  0xcb   : > { %1361 = vmatmul.msk.f32.gmra.mxu2 %vm517_vm3, %v504_v42  ;;  %v315_v42 = vld [vmem:[%s1670_s29 + $0x94] sm:$0xff] }
  0xcc   : > { %942 = vmatpush.msrb.mxu3 %v919_v47 }
  0xcd   : > { %1370 = vmatmul.msk.f32.gmra.mxu0 %vm476_vm1, %v1685_v5  ;;  %v724_v5 = vld [vmem:[#allocation3 + $0x28] sm:$0xff] }
  0xce   : > { %943 = vmatpush.msrb.mxu3 %v918_v48  ;;  %843 = vmatpush.msrb.mxu2 %v724_v5 }
  0xd0   : > { %v389_v59 = vpop.permute.xlu0 %388  ;;  %v453_v60 = vpop.permute.xlu1 %452  ;;  %944 = vmatpush.msrb.mxu3 %v917_v51 }
  0xd1   : > { %v489_v61 = vsel %vm476_vm1, %v312_v54, %v389_v59  ;;  %v756_v54 = vld [vmem:[#allocation3 + $0xa0] sm:$0xff]  ;;  %v754_v59 = vld [vmem:[#allocation3 + $0x90] sm:$0xff] }
  0xd2   : > { %v506_v0 = vsel %vm493_vm2, %v489_v61, %v453_v60  ;;  %945 = vmatpush.msrb.mxu3 %v916_v53  ;;  %779 = vmatpush.msrb.mxu1 %v756_v54  ;;  %v720_v60 = vld [vmem:[#allocation3 + $0x8] sm:$0xff] }
  0xd3   : > { %1362 = vmatmul.msk.f32.gmra.mxu2 %vm517_vm3, %v505_v58  ;;  %1363 = vmatmul.msk.f32.vlgmr.msra.gmra.mxu3 %vm517_vm3, %v506_v0  ;;  %v1565_v58 = vmov 0.0   ;;  %v753_v61 = vld [vmem:[#allocation3 + $0x88] sm:$0xff] }
  0xd4   : > { %946 = vmatpush.msrb.mxu3 %v915_v55  ;;  %683 = vst [vmem:[#allocation2] sm:$0xff] %v1565_v58  ;;  %780 = vmatpush.msrb.mxu1 %v755_v57 }
  0xd5   : > { %1371 = vmatmul.msk.f32.gmra.mxu0 %vm476_vm1, %v1695_v7  ;;  %v723_v7 = vld [vmem:[#allocation3 + $0x20] sm:$0xff]  ;;  %684 = vst [vmem:[#allocation2 + $0x28] sm:$0xff] %v1565_v58 }
  0xd6   : > { %844 = vmatpush.msrb.mxu2 %v723_v7  ;;  %685 = vst [vmem:[#allocation2 + $0x50] sm:$0xff] %v1565_v58  ;;  %781 = vmatpush.msrb.mxu1 %v754_v59 }
  0xd7   : > { %686 = vst [vmem:[#allocation2 + $0x78] sm:$0xff] %v1565_v58 }
  0xd8   : > { %v455_v28 = vpop.permute.xlu0 %454  ;;  %v393_v35 = vpop.permute.xlu1 %392  ;;  %845 = vmatpush.msrb.mxu2 %v722_v56  ;;  %782 = vmatpush.msrb.mxu1 %v753_v61 }
  0xd9   : > { %v507_v31 = vsel %vm493_vm2, %v490_v20, %v455_v28  ;;  %v491_v3 = vsel %vm476_vm1, %v314_v36, %v393_v35 }
  0xda   : > { %v508_v40 = vsel %vm493_vm2, %v491_v3, %v457_v39  ;;  %783 = vmatpush.msrb.mxu1 %v752_v63 }
  0xdb   : > { %1364 = vmatmul.msk.f32.gmra.mxu3 %vm517_vm3, %v507_v31 }
  0xdd   : > { %1372 = vmatmul.msk.f32.gmra.mxu0 %vm476_vm1, %v1703_v9  ;;  %v721_v9 = vld [vmem:[#allocation3 + $0x10] sm:$0xff] }
  0xde   : > { %846 = vmatpush.msrb.mxu2 %v721_v9 }
  0xe0   : > { %v395_v41 = vpop.permute.xlu0 %394  ;;  %v459_v44 = vpop.permute.xlu1 %458  ;;  %847 = vmatpush.msrb.mxu2 %v720_v60 }
  0xe1   : > { %v492_v43 = vsel %vm476_vm1, %v315_v42, %v395_v41 }
  0xe2   : > { %v509_v45 = vsel %vm493_vm2, %v492_v43, %v459_v44  ;;  %848 = vmatpush.msrb.mxu2 %v719_v62 }
  0xe3   : > { %1365 = vmatmul.msk.f32.gmra.mxu3 %vm517_vm3, %v508_v40 }
  0xe5   : > { %1373 = vmatmul.msk.f32.gmra.mxu0 %vm476_vm1, %v1707_v11  ;;  %v1879_v11 = vld [vmem:[%s2012_s2] ss:$0 sm:$0xff] }
  0xeb   : > { %1366 = vmatmul.msk.f32.gmra.mxu3 %vm517_vm3, %v509_v45 }
  0xed   : > { %1374 = vmatmul.msk.f32.gmra.mxu0 %vm476_vm1, %v1716_v13 }
  0xf5   : > { %1375 = vmatmul.msk.f32.gmra.mxu0 %vm476_vm1, %v1724_v15 }
  0xfd   : > { %1376 = vmatmul.msk.f32.gmra.mxu0 %vm476_vm1, %v1728_v17 }
 0x105   : > { %1377 = vmatmul.msk.f32.gmra.mxu0 %vm476_vm1, %v1737_v19 }
 0x10d   : > { %1378 = vmatmul.msk.f32.gmra.mxu0 %vm476_vm1, %v1745_v21 }
 0x115   : > { %1379 = vmatmul.msk.f32.gmra.mxu0 %vm476_vm1, %v1749_v23 }
 0x117   : > { %v587_v0 = vpop.f32.mrf.mxu0 }
 0x118   : > { %v588_v1 = vadd.f32 %v1879_v11, %v587_v0 }
 0x11a   : > { %vm635_vm5 = vcmp.ge.f32.partialorder %v588_v1, 0.0  ;;  %v651_v2 = vmul.f32 0.01, %v588_v1 }
 0x11c   : > { %v667_v6 = vsel %vm635_vm5, %v588_v1, %v651_v2 }
 0x11d   : > { %687 = vst [vmem:[#allocation2 + $0x8] sm:$0xff] %v667_v6  ;;  %947 = vmatmul.f32.vlgmr.msrb.gmra.mxu3 %v667_v6  ;;  %1380 = vmatmul.msk.f32.gmra.mxu0 %vm476_vm1, %v1758_v25 }
 0x11f   : > { %v590_v13 = vpop.f32.mrf.mxu0 }
 0x120   : > { %v591_v15 = vadd.f32 %v1879_v11, %v590_v13 }
 0x122   : > { %vm636_vm6 = vcmp.ge.f32.partialorder %v591_v15, 0.0  ;;  %v652_v8 = vmul.f32 0.01, %v591_v15 }
 0x124   : > { %v668_v10 = vsel %vm636_vm6, %v591_v15, %v652_v8  ;;  %v735_v12 = vld [vmem:[#allocation2 + $0x6] sm:$0xff] }
 0x125   : > { %v703_v14 = vld [vmem:[#allocation2 + $0x4] sm:$0xff]  ;;  %688 = vst [vmem:[#allocation2 + $0x10] sm:$0xff] %v668_v10  ;;  %784 = vmatmul.f32.vlgmr.msrb.gmra.mxu1 %v735_v12  ;;  %950 = vmatmul.f32.gmra.mxu3 %v668_v10 }
 0x126   : > { %849 = vmatmul.f32.vlgmr.msrb.gmra.mxu2 %v703_v14  ;;  %1381 = vmatmul.msk.f32.gmra.mxu0 %vm476_vm1, %v1764_v26 }
 0x127   : > { %v593_v17 = vpop.f32.mrf.mxu0  ;;  %v599_v16 = vpop.f32.mrf.mxu1 }
 0x128   : > { %v594_v18 = vadd.f32 %v1879_v11, %v593_v17  ;;  %v600_v19 = vadd.f32 %v1879_v11, %v599_v16 }
 0x12a   : > { %vm637_vm7 = vcmp.ge.f32.partialorder %v594_v18, 0.0  ;;  %v653_v20 = vmul.f32 0.01, %v594_v18  ;;  %vm639_vm8 = vcmp.ge.f32.partialorder %v600_v19, 0.0  ;;  %v655_v22 = vmul.f32 0.01, %v600_v19 }
 0x12c   : > { %v669_v24 = vsel %vm637_vm7, %v594_v18, %v653_v20  ;;  %v671_v27 = vsel %vm639_vm8, %v600_v19, %v655_v22  ;;  %v736_v28 = vld [vmem:[#allocation2 + $0xe] sm:$0xff] }
 0x12d   : > { %v704_v30 = vld [vmem:[#allocation2 + $0xc] sm:$0xff]  ;;  %689 = vst [vmem:[#allocation2 + $0x18] sm:$0xff] %v669_v24  ;;  %787 = vmatmul.f32.gmra.mxu1 %v736_v28  ;;  %953 = vmatmul.f32.gmra.mxu3 %v669_v24 }
 0x12e   : > { %852 = vmatmul.f32.gmra.mxu2 %v704_v30  ;;  %691 = vst [vmem:[#allocation2 + $0x30] sm:$0xff] %v671_v27  ;;  %1382 = vmatmul.msk.f32.gmra.mxu0 %vm476_vm1, %v1789_v34 }
 0x12f   : > { %v596_v31 = vpop.f32.mrf.mxu0  ;;  %v602_v32 = vpop.f32.mrf.mxu1 }
 0x130   : > { %v597_v21 = vadd.f32 %v1879_v11, %v596_v31  ;;  %v603_v33 = vadd.f32 %v1879_v11, %v602_v32 }
 0x132   : > { %vm638_vm9 = vcmp.ge.f32.partialorder %v597_v21, 0.0  ;;  %v654_v35 = vmul.f32 0.01, %v597_v21  ;;  %vm640_vm10 = vcmp.ge.f32.partialorder %v603_v33, 0.0  ;;  %v656_v36 = vmul.f32 0.01, %v603_v33 }
 0x134   : > { %v670_v37 = vsel %vm638_vm9, %v597_v21, %v654_v35  ;;  %v672_v38 = vsel %vm640_vm10, %v603_v33, %v656_v36  ;;  %v737_v3 = vld [vmem:[#allocation2 + $0x16] sm:$0xff] }
 0x135   : > { %v705_v39 = vld [vmem:[#allocation2 + $0x14] sm:$0xff]  ;;  %690 = vst [vmem:[#allocation2 + $0x20] sm:$0xff] %v670_v37  ;;  %790 = vmatmul.f32.gmra.mxu1 %v737_v3  ;;  %956 = vmatmul.f32.gmra.mxu3 %v670_v37  ;;  %v707_v5 = vld [vmem:[#allocation2 + $0x2c] sm:$0xff] }
 0x136   : > { %855 = vmatmul.f32.gmra.mxu2 %v705_v39  ;;  %692 = vst [vmem:[#allocation2 + $0x38] sm:$0xff] %v672_v38  ;;  %v739_v51 = vld [vmem:[#allocation2 + $0x2e] sm:$0xff]  ;;  %1383 = vmatmul.msk.f32.gmra.mxu0 %vm476_vm1, %v1772_v29 }
 0x137   : > { %v605_v40 = vpop.f32.mrf.mxu1 }
 0x138   : > { %v606_v23 = vadd.f32 %v1879_v11, %v605_v40 }
 0x139   : > { %v1170_v3 = vpop.f32.mrf.mxu0 }
 0x13a   : > { %vm641_vm11 = vcmp.ge.f32.partialorder %v606_v23, 0.0  ;;  %v657_v41 = vmul.f32 0.01, %v606_v23 }
 0x13c   : > { %v673_v42 = vsel %vm641_vm11, %v606_v23, %v657_v41  ;;  %v738_v43 = vld [vmem:[#allocation2 + $0x1e] sm:$0xff] }
 0x13d   : > { %v706_v44 = vld [vmem:[#allocation2 + $0x1c] sm:$0xff]  ;;  %693 = vst [vmem:[#allocation2 + $0x40] sm:$0xff] %v673_v42  ;;  %793 = vmatmul.f32.gmra.mxu1 %v738_v43  ;;  %959 = vmatmul.f32.gmra.mxu3 %v671_v27  ;;  %v708_v55 = vld [vmem:[#allocation2 + $0x34] sm:$0xff] }
 0x13e   : > { %858 = vmatmul.f32.gmra.mxu2 %v706_v44  ;;  %v611_v45 = vpop.f32.mrf.mxu2  ;;  %v740_v54 = vld [vmem:[#allocation2 + $0x36] sm:$0xff] }
 0x13f   : > { %v608_v46 = vpop.f32.mrf.mxu1  ;;  %v612_v4 = vadd.f32 %v1879_v11, %v611_v45 }
 0x140   : > { %v609_v25 = vadd.f32 %v1879_v11, %v608_v46 }
 0x141   : > { %vm643_vm12 = vcmp.ge.f32.partialorder %v612_v4, 0.0  ;;  %v659_v47 = vmul.f32 0.01, %v612_v4 }
 0x142   : > { %vm642_vm13 = vcmp.ge.f32.partialorder %v609_v25, 0.0  ;;  %v658_v48 = vmul.f32 0.01, %v609_v25  ;;  %v1173_v23 = vpop.f32.mrf.mxu0 }
 0x143   : > { %v675_v49 = vsel %vm643_vm12, %v612_v4, %v659_v47 }
 0x144   : > { %v674_v50 = vsel %vm642_vm13, %v609_v25, %v658_v48  ;;  %695 = vst [vmem:[#allocation2 + $0x58] sm:$0xff] %v675_v49  ;;  %v741_v59 = vld [vmem:[#allocation2 + $0x3e] sm:$0xff] }
 0x145   : > { %694 = vst [vmem:[#allocation2 + $0x48] sm:$0xff] %v674_v50  ;;  %796 = vmatmul.f32.gmra.mxu1 %v739_v51  ;;  %962 = vmatmul.f32.gmra.mxu3 %v672_v38  ;;  %v709_v34 = vld [vmem:[#allocation2 + $0x3c] sm:$0xff] }
 0x146   : > { %861 = vmatmul.f32.gmra.mxu2 %v707_v5  ;;  %v614_v52 = vpop.f32.mrf.mxu2  ;;  %v1916_v25 = vld [vmem:[%s2014_s4] ss:$0 sm:$0xff] }
 0x147   : > { %v615_v53 = vadd.f32 %v1879_v11, %v614_v52 }
 0x149   : > { %vm644_vm14 = vcmp.ge.f32.partialorder %v615_v53, 0.0  ;;  %v660_v26 = vmul.f32 0.01, %v615_v53 }
 0x14a   : > { %v1176_v44 = vpop.f32.mrf.mxu0 }
 0x14b   : > { %v676_v7 = vsel %vm644_vm14, %v615_v53, %v660_v26  ;;  %v743_v14 = vld [vmem:[#allocation2 + $0x56] sm:$0xff] }
 0x14c   : > { %696 = vst [vmem:[#allocation2 + $0x60] sm:$0xff] %v676_v7  ;;  %v742_v6 = vld [vmem:[#allocation2 + $0x46] sm:$0xff]  ;;  %v711_v17 = vld [vmem:[#allocation2 + $0x54] sm:$0xff] }
 0x14d   : > { %799 = vmatmul.f32.gmra.mxu1 %v740_v54  ;;  %965 = vmatmul.f32.gmra.mxu3 %v673_v42  ;;  %v710_v13 = vld [vmem:[#allocation2 + $0x44] sm:$0xff] }
 0x14e   : > { %864 = vmatmul.f32.gmra.mxu2 %v708_v55  ;;  %v617_v56 = vpop.f32.mrf.mxu2 }
 0x14f   : > { %v618_v57 = vadd.f32 %v1879_v11, %v617_v56 }
 0x151   : > { %vm645_vm15 = vcmp.ge.f32.partialorder %v618_v57, 0.0  ;;  %v661_v58 = vmul.f32 0.01, %v618_v57 }
 0x152   : > { %v1179_v51 = vpop.f32.mrf.mxu0 }
 0x153   : > { %v677_v9 = vsel %vm645_vm15, %v618_v57, %v661_v58  ;;  %v744_v22 = vld [vmem:[#allocation2 + $0x5e] sm:$0xff] }
 0x154   : > { %697 = vst [vmem:[#allocation2 + $0x68] sm:$0xff] %v677_v9  ;;  %v712_v24 = vld [vmem:[#allocation2 + $0x5c] sm:$0xff] }
 0x155   : > { %802 = vmatmul.f32.gmra.mxu1 %v741_v59  ;;  %968 = vmatmul.f32.gmra.mxu3 %v674_v50 }
 0x156   : > { %867 = vmatmul.f32.gmra.mxu2 %v709_v34  ;;  %v620_v60 = vpop.f32.mrf.mxu2  ;;  %v623_v61 = vpop.f32.mrf.mxu3 }
 0x157   : > { %v621_v62 = vadd.f32 %v1879_v11, %v620_v60  ;;  %v624_v63 = vadd.f32 %v1879_v11, %v623_v61 }
 0x159   : > { %vm646_vm0 = vcmp.ge.f32.partialorder %v621_v62, 0.0  ;;  %v662_v0 = vmul.f32 0.01, %v621_v62  ;;  %vm647_vm2 = vcmp.ge.f32.partialorder %v624_v63, 0.0  ;;  %v663_v1 = vmul.f32 0.01, %v624_v63 }
 0x15a   : > { %v1182_v59 = vpop.f32.mrf.mxu0 }
 0x15b   : > { %v678_v29 = vsel %vm646_vm0, %v621_v62, %v662_v0  ;;  %v679_v2 = vsel %vm647_vm2, %v624_v63, %v663_v1  ;;  %v745_v32 = vld [vmem:[#allocation2 + $0x66] sm:$0xff] }
 0x15c   : > { %698 = vst [vmem:[#allocation2 + $0x70] sm:$0xff] %v678_v29  ;;  %v713_v21 = vld [vmem:[#allocation2 + $0x64] sm:$0xff] }
 0x15d   : > { %805 = vmatmul.f32.gmra.mxu1 %v742_v6  ;;  %699 = vst [vmem:[#allocation2 + $0x80] sm:$0xff] %v679_v2  ;;  %971 = vmatmul.f32.gmra.mxu3 %v675_v49  ;;  %v1921_v49 = vld [vmem:[%s2016_s6] ss:$0 sm:$0xff] }
 0x15e   : > { %870 = vmatmul.f32.gmra.mxu2 %v710_v13  ;;  %v626_v15 = vpop.f32.mrf.mxu3  ;;  %v1171_v52 = vadd.f32 %v1921_v49, %v1170_v3  ;;  %v1174_v34 = vadd.f32 %v1921_v49, %v1173_v23  ;;  %v1177_v13 = vadd.f32 %v1921_v49, %v1176_v44 }
 0x15f   : > { %v627_v8 = vadd.f32 %v1879_v11, %v626_v15 }
 0x161   : > { %vm648_vm1 = vcmp.ge.f32.partialorder %v627_v8, 0.0  ;;  %v664_v10 = vmul.f32 0.01, %v627_v8 }
 0x163   : > { %v680_v12 = vsel %vm648_vm1, %v627_v8, %v664_v10  ;;  %v746_v33 = vld [vmem:[#allocation2 + $0x6e] sm:$0xff]  ;;  %v1185_v8 = vpop.f32.mrf.mxu0 }
 0x164   : > { %700 = vst [vmem:[#allocation2 + $0x88] sm:$0xff] %v680_v12  ;;  %v714_v35 = vld [vmem:[#allocation2 + $0x6c] sm:$0xff]  ;;  %v747_v36 = vld [vmem:[#allocation2 + $0x7e] sm:$0xff] }
 0x165   : > { %808 = vmatmul.f32.gmra.mxu1 %v743_v14  ;;  %974 = vmatmul.f32.gmra.mxu3 %v676_v7  ;;  %v715_v37 = vld [vmem:[#allocation2 + $0x7c] sm:$0xff] }
 0x166   : > { %873 = vmatmul.f32.gmra.mxu2 %v711_v17  ;;  %v629_v16 = vpop.f32.mrf.mxu3 }
 0x167   : > { %v630_v18 = vadd.f32 %v1879_v11, %v629_v16 }
 0x169   : > { %vm649_vm3 = vcmp.ge.f32.partialorder %v630_v18, 0.0  ;;  %v665_v19 = vmul.f32 0.01, %v630_v18 }
 0x16b   : > { %v681_v20 = vsel %vm649_vm3, %v630_v18, %v665_v19  ;;  %v716_v38 = vld [vmem:[#allocation2 + $0x84] sm:$0xff] }
 0x16c   : > { %701 = vst [vmem:[#allocation2 + $0x90] sm:$0xff] %v681_v20 }
 0x16d   : > { %811 = vmatmul.f32.gmra.mxu1 %v744_v22  ;;  %977 = vmatmul.f32.gmra.mxu3 %v677_v9  ;;  %v1180_v22 = vadd.f32 %v1921_v49, %v1179_v51 }
 0x16e   : > { %876 = vmatmul.f32.gmra.mxu2 %v712_v24  ;;  %v632_v27 = vpop.f32.mrf.mxu3 }
 0x16f   : > { %v633_v28 = vadd.f32 %v1879_v11, %v632_v27  ;;  %v748_v11 = vld [vmem:[#allocation2 + $0x86] sm:$0xff] }
 0x171   : > { %vm650_vm4 = vcmp.ge.f32.partialorder %v633_v28, 0.0  ;;  %v666_v30 = vmul.f32 0.01, %v633_v28 }
 0x173   : > { %v682_v31 = vsel %vm650_vm4, %v633_v28, %v666_v30  ;;  %v749_v39 = vld [vmem:[#allocation2 + $0x8e] sm:$0xff] }
 0x174   : > { %702 = vst [vmem:[#allocation2 + $0x98] sm:$0xff] %v682_v31  ;;  %v717_v40 = vld [vmem:[#allocation2 + $0x8c] sm:$0xff] }
 0x175   : > { %814 = vmatmul.f32.gmra.mxu1 %v745_v32  ;;  %980 = vmatmul.f32.gmra.mxu3 %v678_v29  ;;  %v1188_v32 = vpop.f32.mrf.mxu0 }
 0x176   : > { %879 = vmatmul.f32.gmra.mxu2 %v713_v21 }
 0x17b   : > { %v750_v41 = vld [vmem:[#allocation2 + $0x96] sm:$0xff] }
 0x17c   : > { %v718_v42 = vld [vmem:[#allocation2 + $0x94] sm:$0xff] }
 0x17d   : > { %817 = vmatmul.f32.gmra.mxu1 %v746_v33  ;;  %983 = vmatmul.f32.gmra.mxu3 %v679_v2 }
 0x17e   : > { %882 = vmatmul.f32.gmra.mxu2 %v714_v35 }
 0x185   : > { %820 = vmatmul.f32.gmra.mxu1 %v747_v36  ;;  %986 = vmatmul.f32.gmra.mxu3 %v680_v12 }
 0x186   : > { %885 = vmatmul.f32.gmra.mxu2 %v715_v37  ;;  %v1183_v37 = vadd.f32 %v1921_v49, %v1182_v59 }
 0x18d   : > { %823 = vmatmul.f32.gmra.mxu1 %v748_v11  ;;  %989 = vmatmul.f32.gmra.mxu3 %v681_v20 }
 0x18e   : > { %888 = vmatmul.f32.gmra.mxu2 %v716_v38 }
 0x195   : > { %826 = vmatmul.f32.gmra.mxu1 %v749_v39  ;;  %992 = vmatmul.f32.gmra.mxu3 %v682_v31 }
 0x196   : > { %891 = vmatmul.f32.gmra.mxu2 %v717_v40 }
 0x19d   : > { %829 = vmatmul.f32.gmra.mxu1 %v750_v41 }
 0x19e   : > { %894 = vmatmul.f32.gmra.mxu2 %v718_v42 }
 0x1a0   : > { %v948_v43 = vpop.f32.mrf.mxu3 }
 0x1a2   : > { %v785_v45 = vpop.f32.mrf.mxu1 }
 0x1a8   : > { %v951_v47 = vpop.f32.mrf.mxu3 }
 0x1a9   : > { %v850_v46 = vpop.f32.mrf.mxu2 }
 0x1aa   : > { %v851_v4 = vadd.f32 %v850_v46, %v785_v45  ;;  %v788_v48 = vpop.f32.mrf.mxu1  ;;  %v1186_v45 = vadd.f32 %v1921_v49, %v1185_v8 }
 0x1ac   : > { %v996_v50 = vadd.f32 %v948_v43, %v851_v4  ;;  %v1191_v43 = vpop.f32.mrf.mxu0 }
 0x1ae   : > { %v1016_v5 = vadd.f32 %v1916_v25, %v996_v50 }
 0x1b0   : > { %v1048_v53 = vmul.f32 0.01, %v1016_v5  ;;  %vm1032_vm5 = vcmp.ge.f32.partialorder %v1016_v5, 0.0  ;;  %v954_v55 = vpop.f32.mrf.mxu3 }
 0x1b1   : > { %v853_v26 = vpop.f32.mrf.mxu2 }
 0x1b2   : > { %v1064_v7 = vsel %vm1032_vm5, %v1016_v5, %v1048_v53  ;;  %v854_v54 = vadd.f32 %v853_v26, %v788_v48  ;;  %v791_v57 = vpop.f32.mrf.mxu1 }
 0x1b3   : > { %v1218_v56 = vadd.f32 %v1171_v52, %v1064_v7  ;;  %v1189_v7 = vadd.f32 %v1921_v49, %v1188_v32 }
 0x1b4   : > { %v997_v58 = vadd.f32 %v951_v47, %v854_v54  ;;  %v1194_v26 = vpop.f32.mrf.mxu0 }
 0x1b5   : > { %1234 = vst [vmem:[%s1928_s15] sm:$0xff] %v1218_v56 }
 0x1b6   : > { %v1017_v9 = vadd.f32 %v1916_v25, %v997_v58 }
 0x1b8   : > { %v1049_v60 = vmul.f32 0.01, %v1017_v9  ;;  %vm1033_vm6 = vcmp.ge.f32.partialorder %v1017_v9, 0.0  ;;  %v957_v0 = vpop.f32.mrf.mxu3 }
 0x1b9   : > { %v856_v61 = vpop.f32.mrf.mxu2 }
 0x1ba   : > { %v1065_v62 = vsel %vm1033_vm6, %v1017_v9, %v1049_v60  ;;  %v857_v63 = vadd.f32 %v856_v61, %v791_v57  ;;  %v794_v29 = vpop.f32.mrf.mxu1  ;;  %v1192_v61 = vadd.f32 %v1921_v49, %v1191_v43 }
 0x1bb   : > { %v1219_v1 = vadd.f32 %v1174_v34, %v1065_v62 }
 0x1bc   : > { %v998_v2 = vadd.f32 %v954_v55, %v857_v63  ;;  %v1197_v63 = vpop.f32.mrf.mxu0 }
 0x1bd   : > { %1235 = vst [vmem:[%s1928_s15 + $0x8] sm:$0xff] %v1219_v1 }
 0x1be   : > { %v1018_v6 = vadd.f32 %v1916_v25, %v998_v2 }
 0x1c0   : > { %v1050_v15 = vmul.f32 0.01, %v1018_v6  ;;  %vm1034_vm7 = vcmp.ge.f32.partialorder %v1018_v6, 0.0  ;;  %v960_v17 = vpop.f32.mrf.mxu3 }
 0x1c1   : > { %v859_v10 = vpop.f32.mrf.mxu2 }
 0x1c2   : > { %v1066_v12 = vsel %vm1034_vm7, %v1018_v6, %v1050_v15  ;;  %v860_v14 = vadd.f32 %v859_v10, %v794_v29  ;;  %v797_v18 = vpop.f32.mrf.mxu1  ;;  %v1195_v10 = vadd.f32 %v1921_v49, %v1194_v26 }
 0x1c3   : > { %v1220_v16 = vadd.f32 %v1177_v13, %v1066_v12 }
 0x1c4   : > { %v999_v19 = vadd.f32 %v957_v0, %v860_v14 }
 0x1c5   : > { %1236 = vst [vmem:[%s1928_s15 + $0x10] sm:$0xff] %v1220_v16 }
 0x1c6   : > { %v1019_v20 = vadd.f32 %v1916_v25, %v999_v19  ;;  %v1200_v19 = vpop.f32.mrf.mxu0 }
 0x1c8   : > { %v1051_v24 = vmul.f32 0.01, %v1019_v20  ;;  %vm1035_vm8 = vcmp.ge.f32.partialorder %v1019_v20, 0.0  ;;  %v963_v31 = vpop.f32.mrf.mxu3 }
 0x1c9   : > { %v862_v27 = vpop.f32.mrf.mxu2 }
 0x1ca   : > { %v1067_v28 = vsel %vm1035_vm8, %v1019_v20, %v1051_v24  ;;  %v863_v30 = vadd.f32 %v862_v27, %v797_v18  ;;  %v800_v33 = vpop.f32.mrf.mxu1 }
 0x1cb   : > { %v1221_v21 = vadd.f32 %v1180_v22, %v1067_v28  ;;  %v1198_v28 = vadd.f32 %v1921_v49, %v1197_v63 }
 0x1cc   : > { %v1000_v35 = vadd.f32 %v960_v17, %v863_v30 }
 0x1cd   : > { %1237 = vst [vmem:[%s1928_s15 + $0x18] sm:$0xff] %v1221_v21 }
 0x1ce   : > { %v1020_v36 = vadd.f32 %v1916_v25, %v1000_v35 }
 0x1d0   : > { %v1052_v11 = vmul.f32 0.01, %v1020_v36  ;;  %vm1036_vm9 = vcmp.ge.f32.partialorder %v1020_v36, 0.0  ;;  %v966_v40 = vpop.f32.mrf.mxu3 }
 0x1d1   : > { %v865_v38 = vpop.f32.mrf.mxu2 }
 0x1d2   : > { %v1068_v3 = vsel %vm1036_vm9, %v1020_v36, %v1052_v11  ;;  %v866_v39 = vadd.f32 %v865_v38, %v800_v33  ;;  %v803_v41 = vpop.f32.mrf.mxu1  ;;  %v1203_v11 = vpop.f32.mrf.mxu0 }
 0x1d3   : > { %v1222_v23 = vadd.f32 %v1183_v37, %v1068_v3  ;;  %v1201_v3 = vadd.f32 %v1921_v49, %v1200_v19 }
 0x1d4   : > { %v1001_v42 = vadd.f32 %v963_v31, %v866_v39 }
 0x1d5   : > { %1238 = vst [vmem:[%s1928_s15 + $0x20] sm:$0xff] %v1222_v23 }
 0x1d6   : > { %v1021_v44 = vadd.f32 %v1916_v25, %v1001_v42 }
 0x1d8   : > { %v1053_v46 = vmul.f32 0.01, %v1021_v44  ;;  %vm1037_vm10 = vcmp.ge.f32.partialorder %v1021_v44, 0.0  ;;  %v969_v50 = vpop.f32.mrf.mxu3 }
 0x1d9   : > { %v868_v4 = vpop.f32.mrf.mxu2 }
 0x1da   : > { %v1069_v47 = vsel %vm1037_vm10, %v1021_v44, %v1053_v46  ;;  %v869_v48 = vadd.f32 %v868_v4, %v803_v41  ;;  %v806_v5 = vpop.f32.mrf.mxu1  ;;  %v1206_v4 = vpop.f32.mrf.mxu0 }
 0x1db   : > { %v1223_v51 = vadd.f32 %v1186_v45, %v1069_v47  ;;  %v1204_v47 = vadd.f32 %v1921_v49, %v1203_v11 }
 0x1dc   : > { %v1002_v52 = vadd.f32 %v966_v40, %v869_v48 }
 0x1dd   : > { %1239 = vst [vmem:[%s1928_s15 + $0x28] sm:$0xff] %v1223_v51 }
 0x1de   : > { %v1022_v53 = vadd.f32 %v1916_v25, %v1002_v52 }
 0x1e0   : > { %v1054_v54 = vmul.f32 0.01, %v1022_v53  ;;  %vm1038_vm11 = vcmp.ge.f32.partialorder %v1022_v53, 0.0  ;;  %v972_v58 = vpop.f32.mrf.mxu3 }
 0x1e1   : > { %v871_v55 = vpop.f32.mrf.mxu2 }
 0x1e2   : > { %v1070_v56 = vsel %vm1038_vm11, %v1022_v53, %v1054_v54  ;;  %v872_v57 = vadd.f32 %v871_v55, %v806_v5  ;;  %v809_v59 = vpop.f32.mrf.mxu1  ;;  %v1207_v54 = vadd.f32 %v1921_v49, %v1206_v4 }
 0x1e3   : > { %v1224_v9 = vadd.f32 %v1189_v7, %v1070_v56 }
 0x1e4   : > { %v1003_v34 = vadd.f32 %v969_v50, %v872_v57  ;;  %v1209_v57 = vpop.f32.mrf.mxu0 }
 0x1e5   : > { %1240 = vst [vmem:[%s1928_s15 + $0x30] sm:$0xff] %v1224_v9  ;;  %v1210_v63 = vadd.f32 %v1921_v49, %v1209_v57 }
 0x1e6   : > { %v1023_v60 = vadd.f32 %v1916_v25, %v1003_v34 }
 0x1e8   : > { %v1055_v62 = vmul.f32 0.01, %v1023_v60  ;;  %vm1039_vm12 = vcmp.ge.f32.partialorder %v1023_v60, 0.0  ;;  %v975_v2 = vpop.f32.mrf.mxu3 }
 0x1e9   : > { %v874_v0 = vpop.f32.mrf.mxu2 }
 0x1ea   : > { %v1071_v1 = vsel %vm1039_vm12, %v1023_v60, %v1055_v62  ;;  %v875_v29 = vadd.f32 %v874_v0, %v809_v59  ;;  %v812_v13 = vpop.f32.mrf.mxu1 }
 0x1eb   : > { %v1225_v6 = vadd.f32 %v1192_v61, %v1071_v1 }
 0x1ec   : > { %v1004_v15 = vadd.f32 %v972_v58, %v875_v29 }
 0x1ed   : > { %1241 = vst [vmem:[%s1928_s15 + $0x38] sm:$0xff] %v1225_v6 }
 0x1ee   : > { %v1024_v8 = vadd.f32 %v1916_v25, %v1004_v15 }
 0x1f0   : > { %v1056_v12 = vmul.f32 0.01, %v1024_v8  ;;  %vm1040_vm13 = vcmp.ge.f32.partialorder %v1024_v8, 0.0  ;;  %v978_v18 = vpop.f32.mrf.mxu3 }
 0x1f1   : > { %v877_v14 = vpop.f32.mrf.mxu2 }
 0x1f2   : > { %v1072_v17 = vsel %vm1040_vm13, %v1024_v8, %v1056_v12  ;;  %v878_v16 = vadd.f32 %v877_v14, %v812_v13  ;;  %v815_v22 = vpop.f32.mrf.mxu1  ;;  %v1212_v13 = vpop.f32.mrf.mxu0 }
 0x1f3   : > { %v1226_v20 = vadd.f32 %v1195_v10, %v1072_v17  ;;  %v1213_v12 = vadd.f32 %v1921_v49, %v1212_v13 }
 0x1f4   : > { %v1005_v24 = vadd.f32 %v975_v2, %v878_v16 }
 0x1f5   : > { %1242 = vst [vmem:[%s1928_s15 + $0x40] sm:$0xff] %v1226_v20 }
 0x1f6   : > { %v1025_v27 = vadd.f32 %v1916_v25, %v1005_v24 }
 0x1f8   : > { %v1057_v30 = vmul.f32 0.01, %v1025_v27  ;;  %vm1041_vm14 = vcmp.ge.f32.partialorder %v1025_v27, 0.0  ;;  %v981_v36 = vpop.f32.mrf.mxu3 }
 0x1f9   : > { %v880_v31 = vpop.f32.mrf.mxu2 }
 0x1fa   : > { %v1073_v32 = vsel %vm1041_vm14, %v1025_v27, %v1057_v30  ;;  %v881_v21 = vadd.f32 %v880_v31, %v815_v22  ;;  %v818_v35 = vpop.f32.mrf.mxu1  ;;  %v1215_v27 = vpop.f32.mrf.mxu0 }
 0x1fb   : > { %v1227_v33 = vadd.f32 %v1198_v28, %v1073_v32  ;;  %v1216_v30 = vadd.f32 %v1921_v49, %v1215_v27 }
 0x1fc   : > { %v1006_v37 = vadd.f32 %v978_v18, %v881_v21 }
 0x1fd   : > { %1243 = vst [vmem:[%s1928_s15 + $0x48] sm:$0xff] %v1227_v33 }
 0x1fe   : > { %v1026_v38 = vadd.f32 %v1916_v25, %v1006_v37 }
 0x200   : > { %v1058_v39 = vmul.f32 0.01, %v1026_v38  ;;  %vm1042_vm15 = vcmp.ge.f32.partialorder %v1026_v38, 0.0  ;;  %v984_v45 = vpop.f32.mrf.mxu3 }
 0x201   : > { %v883_v40 = vpop.f32.mrf.mxu2 }
 0x202   : > { %v1074_v23 = vsel %vm1042_vm15, %v1026_v38, %v1058_v39  ;;  %v884_v41 = vadd.f32 %v883_v40, %v818_v35  ;;  %v821_v43 = vpop.f32.mrf.mxu1 }
 0x203   : > { %v1228_v42 = vadd.f32 %v1201_v3, %v1074_v23 }
 0x204   : > { %v1007_v44 = vadd.f32 %v981_v36, %v884_v41 }
 0x205   : > { %1244 = vst [vmem:[%s1928_s15 + $0x50] sm:$0xff] %v1228_v42 }
 0x206   : > { %v1027_v46 = vadd.f32 %v1916_v25, %v1007_v44 }
 0x208   : > { %v1059_v48 = vmul.f32 0.01, %v1027_v46  ;;  %vm1043_vm0 = vcmp.ge.f32.partialorder %v1027_v46, 0.0  ;;  %v987_v55 = vpop.f32.mrf.mxu3 }
 0x209   : > { %v886_v50 = vpop.f32.mrf.mxu2 }
 0x20a   : > { %v1075_v51 = vsel %vm1043_vm0, %v1027_v46, %v1059_v48  ;;  %v887_v5 = vadd.f32 %v886_v50, %v821_v43  ;;  %v824_v26 = vpop.f32.mrf.mxu1 }
 0x20b   : > { %v1229_v52 = vadd.f32 %v1204_v47, %v1075_v51 }
 0x20c   : > { %v1008_v53 = vadd.f32 %v984_v45, %v887_v5 }
 0x20d   : > { %1245 = vst [vmem:[%s1928_s15 + $0x58] sm:$0xff] %v1229_v52 }
 0x20e   : > { %v1028_v7 = vadd.f32 %v1916_v25, %v1008_v53 }
 0x210   : > { %v1060_v56 = vmul.f32 0.01, %v1028_v7  ;;  %vm1044_vm2 = vcmp.ge.f32.partialorder %v1028_v7, 0.0  ;;  %v990_v29 = vpop.f32.mrf.mxu3 }
 0x211   : > { %v889_v58 = vpop.f32.mrf.mxu2 }
 0x212   : > { %v1076_v9 = vsel %vm1044_vm2, %v1028_v7, %v1060_v56  ;;  %v890_v59 = vadd.f32 %v889_v58, %v824_v26  ;;  %v827_v62 = vpop.f32.mrf.mxu1 }
 0x213   : > { %v1230_v34 = vadd.f32 %v1207_v54, %v1076_v9 }
 0x214   : > { %v1009_v60 = vadd.f32 %v987_v55, %v890_v59 }
 0x215   : > { %1246 = vst [vmem:[%s1928_s15 + $0x60] sm:$0xff] %v1230_v34 }
 0x216   : > { %v1029_v61 = vadd.f32 %v1916_v25, %v1009_v60 }
 0x218   : > { %v1061_v0 = vmul.f32 0.01, %v1029_v61  ;;  %vm1045_vm1 = vcmp.ge.f32.partialorder %v1029_v61, 0.0  ;;  %v993_v22 = vpop.f32.mrf.mxu3 }
 0x219   : > { %v892_v1 = vpop.f32.mrf.mxu2 }
 0x21a   : > { %v1077_v2 = vsel %vm1045_vm1, %v1029_v61, %v1061_v0  ;;  %v893_v6 = vadd.f32 %v892_v1, %v827_v62  ;;  %v830_v17 = vpop.f32.mrf.mxu1 }
 0x21b   : > { %v1231_v15 = vadd.f32 %v1210_v63, %v1077_v2 }
 0x21c   : > { %v1010_v8 = vadd.f32 %v990_v29, %v893_v6 }
 0x21d   : > { %1247 = vst [vmem:[%s1928_s15 + $0x68] sm:$0xff] %v1231_v15 }
 0x21e   : > { %v1030_v10 = vadd.f32 %v1916_v25, %v1010_v8 }
 0x220   : > { %v1062_v14 = vmul.f32 0.01, %v1030_v10  ;;  %vm1046_vm3 = vcmp.ge.f32.partialorder %v1030_v10, 0.0 }
 0x221   : > { %v895_v16 = vpop.f32.mrf.mxu2 }
 0x222   : > { %v1078_v18 = vsel %vm1046_vm3, %v1030_v10, %v1062_v14  ;;  %v896_v19 = vadd.f32 %v895_v16, %v830_v17 }
 0x223   : > { %v1232_v20 = vadd.f32 %v1213_v12, %v1078_v18 }
 0x224   : > { %v1011_v24 = vadd.f32 %v993_v22, %v896_v19 }
 0x225   : > { %1248 = vst [vmem:[%s1928_s15 + $0x70] sm:$0xff] %v1232_v20 }
 0x226   : > { %v1031_v28 = vadd.f32 %v1916_v25, %v1011_v24 }
 0x228   : > { %v1063_v31 = vmul.f32 0.01, %v1031_v28  ;;  %vm1047_vm4 = vcmp.ge.f32.partialorder %v1031_v28, 0.0 }
 0x22a   : > { %v1079_v32 = vsel %vm1047_vm4, %v1031_v28, %v1063_v31 }
 0x22b   : > { %v1233_v21 = vadd.f32 %v1216_v30, %v1079_v32 }
 0x22d   : > { %1249 = vst [vmem:[%s1928_s15 + $0x78] sm:$0xff] %v1233_v21 }
 0x22e   : > { %1519 = shalt.err (!%p1516_p8)
}
 0x22f   : > { %s1566_s13 = smov 128   ;;  %s1567_s15 = smov 8  }
 0x230   : > { %1406 = dma.vmem_to_hbm [thread:$0]  (%p1646_p5), %s1265_s20, 2048, %s1267_s28, %s1251_s21, %s1566_s13, %s1566_s13, %s1567_s15  }
 0x231 PF: > { %p1418_p9 = scmp.ge.s32.totalorder %s1558_s27, 2  ;;  %s1281_s17 = sand.u32 1, %s1546_s24  }
 0x232   : > { %s1282_s18 = scalar_lea.sflag [#allocation5], %s1281_s17 }
 0x233   : > { %p1413_p10 = pnand %p1418_p9, %p1650_p6 }
 0x235   : > { %p1414_p11 = pneg %p1413_p10 }
 0x237   : > { %1541 = dma.done.wait (%p1414_p11), %s1282_s18, 2048  }
 0x238   : > { %1543 = vsyncadd (%p1414_p11), %s1282_s18, 4294965248  ;;  %p18_p12 = scmp.ge.s32.totalorder %s1633_s30, 4   ;;  %s2020_s24 = smov %s1550_s25 }
 0x239   : > { %s2021_s25 = smov %s1554_s26  ;;  %s2022_s26 = smov %s1644_s10 }
 0x23a   : > { %s2023_s27 = smov %s1633_s30  ;;  %20 = sbr.rel (!%p18_p12) target bundleno = 4 (0x4), region = 90 }
 0x23f   :  { %1288 = vsyncpa [#allocation4], 1 }
 0x240   :  { %1290 = vsyncpa [#allocation4 + $0x1], 1 }
 0x241   :  { %1291 = vsyncpa [#allocation5], 1 }
 0x242   :  { %1293 = vsyncpa [#allocation5 + $0x1], 1 }

</bundles_post_ra>
